<compile_context>
chip_gen: v7x
topology: tpu7x:2x2x1
jax: 0.10.0
libtpu: 0.0.40
codegen_flags: <defaults>
</compile_context>

<pallas_src>
import math

import jax
import jax.numpy as jnp
from jax.experimental import pallas as pl


# ----------------------------- config ---------------------------------------
VOCAB_SIZE = 50
EMBED_DIM = 32
N_LAYERS = 2
N_HEADS = 4
MAX_LENGTH = 8
FFD = 4
BATCH = 2
LN_EPS = 1e-5

V_PAD = 128          # lane-dense logits: pad vocab 50 -> 128, slice outside
V_TAB = 64           # embedding table rows padded 50 -> 64 (sublane aligned)


# --------------------- positional encoding (plain JAX glue) -----------------
def positional_encoding(seq_len, embed_dim, n=10000):
    # Matches the PyTorch reference exactly: powers = n ** (arange(0, d//2)/d)
    assert embed_dim % 2 == 0, "The embedding dimension must be even"
    positions = jnp.arange(0, seq_len, dtype=jnp.float32)[:, None]        # (L, 1)
    powers = jnp.power(float(n), jnp.arange(0, embed_dim // 2,
                                            dtype=jnp.float32) / embed_dim)
    embed_in = positions / powers                                         # (L, D/2)
    pe = jnp.zeros((seq_len, embed_dim), jnp.float32)
    pe = pe.at[:, 0::2].set(jnp.sin(embed_in))
    pe = pe.at[:, 1::2].set(jnp.cos(embed_in))
    return pe


# --------------------------- kernel helpers ----------------------------------
def _layernorm(x, gamma, beta):
    mean = jnp.mean(x, axis=-1, keepdims=True)
    var = jnp.mean(jnp.square(x - mean), axis=-1, keepdims=True)
    return (x - mean) * jax.lax.rsqrt(var + LN_EPS) * gamma + beta


# --------------------------- fused encoder kernel ----------------------------
def encoder_kernel(tok_ref, embed_ref, attnw_ref, ffn1_ref, w2_ref, vec_ref,
                   head_ref, o_ref):
    N = tok_ref.shape[0]                 # B * L = 16
    D = EMBED_DIM                        # 32
    H, dh = N_HEADS, EMBED_DIM // N_HEADS
    L, B = MAX_LENGTH, N // MAX_LENGTH
    NL = attnw_ref.shape[0]
    scale = 1.0 / math.sqrt(dh)

    # ---- fused embedding gather (one-hot matmul) + positional encoding ------
    emb_slab = embed_ref[...]                              # (V_TAB + L, D)
    table = emb_slab[0:V_TAB, :]                           # (64, 32)
    pe = emb_slab[V_TAB:V_TAB + L, :]                      # (8, 32)
    tok = tok_ref[...]                                     # (16, 1) int32
    iota = jax.lax.broadcasted_iota(jnp.int32, (N, V_TAB), 1)
    onehot = (iota == tok).astype(jnp.float32)             # (16, 64)
    x = jnp.dot(onehot, table, preferred_element_type=jnp.float32)   # (16, 32)
    x = x + jnp.concatenate([pe] * B, axis=0)              # PE tiled over batch
    # dropout == identity in eval mode

    for layer in range(NL):                       # static unroll (N_LAYERS = 2)
        aw_full = attnw_ref[layer]                          # (40, 128)
        w_qkvo = aw_full[0:D, :]                            # (32, 128) [Wq|Wk|Wv|Wo]
        b_qkv = aw_full[D:D + 1, :]                         # (1, 128)  [bq|bk|bv|0]
        vec = vec_ref[layer]                                # (8, 32)
        bo, g1, be1 = vec[0:1, :], vec[1:2, :], vec[2:3, :]
        b2, g2, be2 = vec[3:4, :], vec[4:5, :], vec[5:6, :]

        # ---- multi-head self-attention (mask=None in the reference forward) -
        qkvo = jnp.dot(x, w_qkvo,
                       preferred_element_type=jnp.float32) + b_qkv   # (16, 128)
        ctx_parts = []
        for hh in range(H):                                 # static, H = 4
            q = qkvo[:, 0 * D + hh * dh: 0 * D + (hh + 1) * dh]      # (16, 8)
            k = qkvo[:, 1 * D + hh * dh: 1 * D + (hh + 1) * dh]
            v = qkvo[:, 2 * D + hh * dh: 2 * D + (hh + 1) * dh]
            q3 = q.reshape(B, L, dh)                        # major split only
            k3 = k.reshape(B, L, dh)
            v3 = v.reshape(B, L, dh)
            s = jnp.einsum('bld,bmd->blm', q3, k3,
                           preferred_element_type=jnp.float32) * scale
            s = s - jnp.max(s, axis=-1, keepdims=True)
            p = jnp.exp(s)
            p = p * pl.reciprocal(jnp.sum(p, axis=-1, keepdims=True), approx=True)
            c = jnp.einsum('blm,bmd->bld', p, v3,
                           preferred_element_type=jnp.float32)        # (B, L, dh)
            ctx_parts.append(c.reshape(N, dh))
        ctx = jnp.concatenate(ctx_parts, axis=-1)                     # (16, 32)
        wo = w_qkvo[:, 3 * D:4 * D]                                   # (32, 32)
        attn = jnp.dot(ctx, wo, preferred_element_type=jnp.float32) + bo

        x = _layernorm(x + attn, g1, be1)

        # ---- position-wise feed-forward (ReLU) ------------------------------
        f1 = ffn1_ref[layer]                                # (40, 128)
        w1 = f1[0:D, :]                                     # (32, 128)
        b1 = f1[D:D + 1, :]                                 # (1, 128)
        w2 = w2_ref[layer]                                  # (128, 32)
        ff = jnp.dot(x, w1, preferred_element_type=jnp.float32) + b1
        ff = jnp.maximum(ff, 0.0)
        ff = jnp.dot(ff, w2, preferred_element_type=jnp.float32) + b2

        x = _layernorm(x + ff, g2, be2)

    # ---- head projection: single lane-dense (16,32)x(32,128) dot ------------
    hs = head_ref[...]                                      # (40, 128)
    wh = hs[0:D, :]                                         # (32, 128)
    bh = hs[D:D + 1, :]                                     # (1, 128)
    logits = jnp.dot(x, wh, preferred_element_type=jnp.float32) + bh  # (16, 128)
    o_ref[...] = logits.astype(o_ref.dtype)


# --------------------------- parameter init ----------------------------------
def init_params(key):
    D, H, V, L, F, NL = EMBED_DIM, N_HEADS, VOCAB_SIZE, MAX_LENGTH, FFD, N_LAYERS
    hid = F * D

    def nrm(k, shape, scale=0.02):
        return scale * jax.random.normal(k, shape, jnp.float32)

    keys = jax.random.split(key, 8)

    # Embedding table (padded to V_TAB rows) + positional encoding, one slab.
    emb = nrm(keys[0], (V, D), 1.0)
    emb = jnp.pad(emb, ((0, V_TAB - V), (0, 0)))                     # (64, 32)
    embed_slab = jnp.concatenate([emb, positional_encoding(L, D)], axis=0)  # (72, 32)

    # Attention slab per layer: rows 0:32 = [Wq|Wk|Wv|Wo], row 32 = [bq|bk|bv|0].
    wq, wk = nrm(keys[1], (NL, D, D)), nrm(keys[2], (NL, D, D))
    wv, wo = nrm(keys[3], (NL, D, D)), nrm(keys[4], (NL, D, D))
    w_qkvo = jnp.concatenate([wq, wk, wv, wo], axis=-1)              # (NL, 32, 128)
    b_qkv = jnp.zeros((NL, 1, 4 * D), jnp.float32)                   # zero-init biases
    attn_slab = jnp.concatenate(
        [w_qkvo, b_qkv, jnp.zeros((NL, 7, 4 * D), jnp.float32)], axis=1)   # (NL, 40, 128)

    # FFN slab 1 per layer: rows 0:32 = W1 (D -> 4D), row 32 = b1.
    w1 = nrm(keys[5], (NL, D, hid))
    b1 = jnp.zeros((NL, 1, hid), jnp.float32)
    ffn1_slab = jnp.concatenate(
        [w1, b1, jnp.zeros((NL, 7, hid), jnp.float32)], axis=1)      # (NL, 40, 128)
    w2 = nrm(keys[6], (NL, hid, D))                                  # (NL, 128, 32)

    # 32-wide per-layer vectors: rows [bo, g1, be1, b2, g2, be2, 0, 0].
    zeros = jnp.zeros((NL, 1, D), jnp.float32)
    ones = jnp.ones((NL, 1, D), jnp.float32)
    vecs = jnp.concatenate(
        [zeros, ones, zeros, zeros, ones, zeros,
         jnp.zeros((NL, 2, D), jnp.float32)], axis=1)                # (NL, 8, 32)

    # Head slab: rows 0:32 = Wh (vocab padded to 128 lanes), row 32 = bh.
    wh = jnp.pad(nrm(keys[7], (D, V)), ((0, 0), (0, V_PAD - V)))     # (32, 128)
    bh = jnp.zeros((1, V_PAD), jnp.float32)
    head_slab = jnp.concatenate(
        [wh, bh, jnp.zeros((7, V_PAD), jnp.float32)], axis=0)        # (40, 128)

    return {"embed_slab": embed_slab, "attn_slab": attn_slab,
            "ffn1_slab": ffn1_slab, "w2": w2, "vecs": vecs,
            "head_slab": head_slab}


# --------------------------- encoder forward ---------------------------------
def encoder_forward(params, tokens):
    B, L = tokens.shape
    tok2d = tokens.reshape(B * L, 1).astype(jnp.int32)
    # Single fused kernel, no grid: whole problem is one VMEM-resident block.
    logits = pl.pallas_call(
        encoder_kernel,
        out_shape=jax.ShapeDtypeStruct((B * L, V_PAD), jnp.float32),
    )(tok2d, params["embed_slab"], params["attn_slab"], params["ffn1_slab"],
      params["w2"], params["vecs"], params["head_slab"])
    return logits.reshape(B, L, V_PAD)[..., :VOCAB_SIZE]             # (B, L, V)


# ------------------------------- main ----------------------------------------
if __name__ == "__main__":
    key = jax.random.PRNGKey(0)
    pkey, xkey = jax.random.split(key)
    params = init_params(pkey)
    tokens = jax.random.randint(xkey, (BATCH, MAX_LENGTH), 0, VOCAB_SIZE,
                                dtype=jnp.int32)

    logits = jax.jit(encoder_forward)(params, tokens)
    jax.block_until_ready(logits)
    assert logits.shape == (BATCH, MAX_LENGTH, VOCAB_SIZE), logits.shape
    assert bool(jnp.all(jnp.isfinite(logits)))
    print("KERNEL_OK")
</pallas_src>

<mosaic_0001>
module attributes {stable_mosaic.version = 11 : i64} {
  func.func @encoder_kernel(%arg0: memref<16x1xi32, #tpu.memory_space<vmem>>, %arg1: memref<72x32xf32, #tpu.memory_space<vmem>>, %arg2: memref<2x40x128xf32, #tpu.memory_space<vmem>>, %arg3: memref<2x40x128xf32, #tpu.memory_space<vmem>>, %arg4: memref<2x128x32xf32, #tpu.memory_space<vmem>>, %arg5: memref<2x8x32xf32, #tpu.memory_space<vmem>>, %arg6: memref<40x128xf32, #tpu.memory_space<vmem>>, %arg7: memref<16x128xf32, #tpu.memory_space<vmem>>) attributes {dimension_semantics = [], scalar_prefetch = 0 : i64, scratch_operands = 0 : i64, tpu.core_type = #tpu.core_type<tc>} {
    %c0 = arith.constant 0 : index
    %c0_0 = arith.constant 0 : index
    %0 = vector.load %arg1[%c0, %c0_0] : memref<72x32xf32, #tpu.memory_space<vmem>>, vector<72x32xf32>
    %1 = vector.extract_strided_slice %0 {offsets = [0, 0], sizes = [64, 32], strides = [1, 1]} : vector<72x32xf32> to vector<64x32xf32>
    %2 = vector.extract_strided_slice %0 {offsets = [64, 0], sizes = [8, 32], strides = [1, 1]} : vector<72x32xf32> to vector<8x32xf32>
    %c0_1 = arith.constant 0 : index
    %c0_2 = arith.constant 0 : index
    %3 = vector.load %arg0[%c0_1, %c0_2] : memref<16x1xi32, #tpu.memory_space<vmem>>, vector<16x1xi32>
    %4 = tpu.iota {dimensions = array<i32: 1>} : vector<16x64xi32>
    %5 = vector.broadcast %3 : vector<16x1xi32> to vector<16x64xi32>
    %6 = arith.cmpi eq, %4, %5 : vector<16x64xi32>
    %7 = arith.extui %6 : vector<16x64xi1> to vector<16x64xi32>
    %8 = arith.sitofp %7 : vector<16x64xi32> to vector<16x64xf32>
    %cst = arith.constant dense<0.000000e+00> : vector<16x32xf32>
    %9 = tpu.matmul %8, %1, %cst {dimension_numbers = #tpu.dot_dimension_numbers<[1], [0], [0], [1], [0, 0, 1, 1], [], []>} : vector<16x64xf32>, vector<64x32xf32>, vector<16x32xf32> -> vector<16x32xf32>
    %10 = tpu.concatenate %2, %2 in 0 : vector<8x32xf32>, vector<8x32xf32> -> vector<16x32xf32>
    %11 = arith.addf %9, %10 : vector<16x32xf32>
    %c0_3 = arith.constant 0 : index
    %c0_4 = arith.constant 0 : index
    %c0_5 = arith.constant 0 : index
    %12 = vector.load %arg2[%c0_3, %c0_4, %c0_5] : memref<2x40x128xf32, #tpu.memory_space<vmem>>, vector<1x40x128xf32>
    %13 = vector.shape_cast %12 : vector<1x40x128xf32> to vector<40x128xf32>
    %14 = vector.extract_strided_slice %13 {offsets = [0, 0], sizes = [32, 128], strides = [1, 1]} : vector<40x128xf32> to vector<32x128xf32>
    %15 = vector.extract_strided_slice %13 {offsets = [32, 0], sizes = [1, 128], strides = [1, 1]} : vector<40x128xf32> to vector<1x128xf32>
    %c0_6 = arith.constant 0 : index
    %c0_7 = arith.constant 0 : index
    %c0_8 = arith.constant 0 : index
    %16 = vector.load %arg5[%c0_6, %c0_7, %c0_8] : memref<2x8x32xf32, #tpu.memory_space<vmem>>, vector<1x8x32xf32>
    %17 = vector.shape_cast %16 : vector<1x8x32xf32> to vector<8x32xf32>
    %18 = vector.extract_strided_slice %17 {offsets = [0, 0], sizes = [1, 32], strides = [1, 1]} : vector<8x32xf32> to vector<1x32xf32>
    %19 = vector.extract_strided_slice %17 {offsets = [1, 0], sizes = [1, 32], strides = [1, 1]} : vector<8x32xf32> to vector<1x32xf32>
    %20 = vector.extract_strided_slice %17 {offsets = [2, 0], sizes = [1, 32], strides = [1, 1]} : vector<8x32xf32> to vector<1x32xf32>
    %21 = vector.extract_strided_slice %17 {offsets = [3, 0], sizes = [1, 32], strides = [1, 1]} : vector<8x32xf32> to vector<1x32xf32>
    %22 = vector.extract_strided_slice %17 {offsets = [4, 0], sizes = [1, 32], strides = [1, 1]} : vector<8x32xf32> to vector<1x32xf32>
    %23 = vector.extract_strided_slice %17 {offsets = [5, 0], sizes = [1, 32], strides = [1, 1]} : vector<8x32xf32> to vector<1x32xf32>
    %cst_9 = arith.constant dense<0.000000e+00> : vector<16x128xf32>
    %24 = tpu.matmul %11, %14, %cst_9 {dimension_numbers = #tpu.dot_dimension_numbers<[1], [0], [0], [1], [0, 0, 1, 1], [], []>} : vector<16x32xf32>, vector<32x128xf32>, vector<16x128xf32> -> vector<16x128xf32>
    %25 = vector.broadcast %15 : vector<1x128xf32> to vector<16x128xf32>
    %26 = arith.addf %24, %25 : vector<16x128xf32>
    %27 = vector.extract_strided_slice %26 {offsets = [0, 0], sizes = [16, 8], strides = [1, 1]} : vector<16x128xf32> to vector<16x8xf32>
    %28 = vector.extract_strided_slice %26 {offsets = [0, 32], sizes = [16, 8], strides = [1, 1]} : vector<16x128xf32> to vector<16x8xf32>
    %29 = vector.extract_strided_slice %26 {offsets = [0, 64], sizes = [16, 8], strides = [1, 1]} : vector<16x128xf32> to vector<16x8xf32>
    %30 = vector.shape_cast %27 : vector<16x8xf32> to vector<2x8x8xf32>
    %31 = vector.shape_cast %28 : vector<16x8xf32> to vector<2x8x8xf32>
    %32 = vector.shape_cast %29 : vector<16x8xf32> to vector<2x8x8xf32>
    "tpu.trace_start"() <{level = 10 : i32, message = "bld,bmd->blm"}> : () -> ()
    %cst_10 = arith.constant dense<0.000000e+00> : vector<2x8x8xf32>
    %33 = tpu.matmul %30, %31, %cst_10 {dimension_numbers = #tpu.dot_dimension_numbers<[2], [2], [1], [1], [0, 0, 0, 1, 1, 1], [0], [0]>} : vector<2x8x8xf32>, vector<2x8x8xf32>, vector<2x8x8xf32> -> vector<2x8x8xf32>
    "tpu.trace_stop"() : () -> ()
    %cst_11 = arith.constant 0.353553385 : f32
    %34 = vector.broadcast %cst_11 : f32 to vector<2x8x8xf32>
    %35 = arith.mulf %33, %34 : vector<2x8x8xf32>
    %cst_12 = arith.constant dense<0xFF800000> : vector<2x8xf32>
    %36 = vector.multi_reduction <maximumf>, %35, %cst_12 [2] : vector<2x8x8xf32> to vector<2x8xf32>
    %37 = vector.shape_cast %36 : vector<2x8xf32> to vector<2x8x1xf32>
    %38 = vector.broadcast %37 : vector<2x8x1xf32> to vector<2x8x8xf32>
    %39 = arith.subf %35, %38 : vector<2x8x8xf32>
    %40 = math.exp %39 : vector<2x8x8xf32>
    %cst_13 = arith.constant dense<0.000000e+00> : vector<2x8xf32>
    %41 = vector.multi_reduction <add>, %40, %cst_13 [2] : vector<2x8x8xf32> to vector<2x8xf32>
    %42 = vector.shape_cast %41 : vector<2x8xf32> to vector<2x8x1xf32>
    %43 = tpu.reciprocal %42 {approx = true} : vector<2x8x1xf32> -> vector<2x8x1xf32>
    %44 = vector.broadcast %43 : vector<2x8x1xf32> to vector<2x8x8xf32>
    %45 = arith.mulf %40, %44 : vector<2x8x8xf32>
    "tpu.trace_start"() <{level = 10 : i32, message = "blm,bmd->bld"}> : () -> ()
    %cst_14 = arith.constant dense<0.000000e+00> : vector<2x8x8xf32>
    %46 = tpu.matmul %45, %32, %cst_14 {dimension_numbers = #tpu.dot_dimension_numbers<[2], [1], [1], [2], [0, 0, 0, 1, 1, 2], [0], [0]>} : vector<2x8x8xf32>, vector<2x8x8xf32>, vector<2x8x8xf32> -> vector<2x8x8xf32>
    "tpu.trace_stop"() : () -> ()
    %47 = vector.shape_cast %46 : vector<2x8x8xf32> to vector<16x8xf32>
    %48 = vector.extract_strided_slice %26 {offsets = [0, 8], sizes = [16, 8], strides = [1, 1]} : vector<16x128xf32> to vector<16x8xf32>
    %49 = vector.extract_strided_slice %26 {offsets = [0, 40], sizes = [16, 8], strides = [1, 1]} : vector<16x128xf32> to vector<16x8xf32>
    %50 = vector.extract_strided_slice %26 {offsets = [0, 72], sizes = [16, 8], strides = [1, 1]} : vector<16x128xf32> to vector<16x8xf32>
    %51 = vector.shape_cast %48 : vector<16x8xf32> to vector<2x8x8xf32>
    %52 = vector.shape_cast %49 : vector<16x8xf32> to vector<2x8x8xf32>
    %53 = vector.shape_cast %50 : vector<16x8xf32> to vector<2x8x8xf32>
    "tpu.trace_start"() <{level = 10 : i32, message = "bld,bmd->blm"}> : () -> ()
    %cst_15 = arith.constant dense<0.000000e+00> : vector<2x8x8xf32>
    %54 = tpu.matmul %51, %52, %cst_15 {dimension_numbers = #tpu.dot_dimension_numbers<[2], [2], [1], [1], [0, 0, 0, 1, 1, 1], [0], [0]>} : vector<2x8x8xf32>, vector<2x8x8xf32>, vector<2x8x8xf32> -> vector<2x8x8xf32>
    "tpu.trace_stop"() : () -> ()
    %cst_16 = arith.constant 0.353553385 : f32
    %55 = vector.broadcast %cst_16 : f32 to vector<2x8x8xf32>
    %56 = arith.mulf %54, %55 : vector<2x8x8xf32>
    %cst_17 = arith.constant dense<0xFF800000> : vector<2x8xf32>
    %57 = vector.multi_reduction <maximumf>, %56, %cst_17 [2] : vector<2x8x8xf32> to vector<2x8xf32>
    %58 = vector.shape_cast %57 : vector<2x8xf32> to vector<2x8x1xf32>
    %59 = vector.broadcast %58 : vector<2x8x1xf32> to vector<2x8x8xf32>
    %60 = arith.subf %56, %59 : vector<2x8x8xf32>
    %61 = math.exp %60 : vector<2x8x8xf32>
    %cst_18 = arith.constant dense<0.000000e+00> : vector<2x8xf32>
    %62 = vector.multi_reduction <add>, %61, %cst_18 [2] : vector<2x8x8xf32> to vector<2x8xf32>
    %63 = vector.shape_cast %62 : vector<2x8xf32> to vector<2x8x1xf32>
    %64 = tpu.reciprocal %63 {approx = true} : vector<2x8x1xf32> -> vector<2x8x1xf32>
    %65 = vector.broadcast %64 : vector<2x8x1xf32> to vector<2x8x8xf32>
    %66 = arith.mulf %61, %65 : vector<2x8x8xf32>
    "tpu.trace_start"() <{level = 10 : i32, message = "blm,bmd->bld"}> : () -> ()
    %cst_19 = arith.constant dense<0.000000e+00> : vector<2x8x8xf32>
    %67 = tpu.matmul %66, %53, %cst_19 {dimension_numbers = #tpu.dot_dimension_numbers<[2], [1], [1], [2], [0, 0, 0, 1, 1, 2], [0], [0]>} : vector<2x8x8xf32>, vector<2x8x8xf32>, vector<2x8x8xf32> -> vector<2x8x8xf32>
    "tpu.trace_stop"() : () -> ()
    %68 = vector.shape_cast %67 : vector<2x8x8xf32> to vector<16x8xf32>
    %69 = vector.extract_strided_slice %26 {offsets = [0, 16], sizes = [16, 8], strides = [1, 1]} : vector<16x128xf32> to vector<16x8xf32>
    %70 = vector.extract_strided_slice %26 {offsets = [0, 48], sizes = [16, 8], strides = [1, 1]} : vector<16x128xf32> to vector<16x8xf32>
    %71 = vector.extract_strided_slice %26 {offsets = [0, 80], sizes = [16, 8], strides = [1, 1]} : vector<16x128xf32> to vector<16x8xf32>
    %72 = vector.shape_cast %69 : vector<16x8xf32> to vector<2x8x8xf32>
    %73 = vector.shape_cast %70 : vector<16x8xf32> to vector<2x8x8xf32>
    %74 = vector.shape_cast %71 : vector<16x8xf32> to vector<2x8x8xf32>
    "tpu.trace_start"() <{level = 10 : i32, message = "bld,bmd->blm"}> : () -> ()
    %cst_20 = arith.constant dense<0.000000e+00> : vector<2x8x8xf32>
    %75 = tpu.matmul %72, %73, %cst_20 {dimension_numbers = #tpu.dot_dimension_numbers<[2], [2], [1], [1], [0, 0, 0, 1, 1, 1], [0], [0]>} : vector<2x8x8xf32>, vector<2x8x8xf32>, vector<2x8x8xf32> -> vector<2x8x8xf32>
    "tpu.trace_stop"() : () -> ()
    %cst_21 = arith.constant 0.353553385 : f32
    %76 = vector.broadcast %cst_21 : f32 to vector<2x8x8xf32>
    %77 = arith.mulf %75, %76 : vector<2x8x8xf32>
    %cst_22 = arith.constant dense<0xFF800000> : vector<2x8xf32>
    %78 = vector.multi_reduction <maximumf>, %77, %cst_22 [2] : vector<2x8x8xf32> to vector<2x8xf32>
    %79 = vector.shape_cast %78 : vector<2x8xf32> to vector<2x8x1xf32>
    %80 = vector.broadcast %79 : vector<2x8x1xf32> to vector<2x8x8xf32>
    %81 = arith.subf %77, %80 : vector<2x8x8xf32>
    %82 = math.exp %81 : vector<2x8x8xf32>
    %cst_23 = arith.constant dense<0.000000e+00> : vector<2x8xf32>
    %83 = vector.multi_reduction <add>, %82, %cst_23 [2] : vector<2x8x8xf32> to vector<2x8xf32>
    %84 = vector.shape_cast %83 : vector<2x8xf32> to vector<2x8x1xf32>
    %85 = tpu.reciprocal %84 {approx = true} : vector<2x8x1xf32> -> vector<2x8x1xf32>
    %86 = vector.broadcast %85 : vector<2x8x1xf32> to vector<2x8x8xf32>
    %87 = arith.mulf %82, %86 : vector<2x8x8xf32>
    "tpu.trace_start"() <{level = 10 : i32, message = "blm,bmd->bld"}> : () -> ()
    %cst_24 = arith.constant dense<0.000000e+00> : vector<2x8x8xf32>
    %88 = tpu.matmul %87, %74, %cst_24 {dimension_numbers = #tpu.dot_dimension_numbers<[2], [1], [1], [2], [0, 0, 0, 1, 1, 2], [0], [0]>} : vector<2x8x8xf32>, vector<2x8x8xf32>, vector<2x8x8xf32> -> vector<2x8x8xf32>
    "tpu.trace_stop"() : () -> ()
    %89 = vector.shape_cast %88 : vector<2x8x8xf32> to vector<16x8xf32>
    %90 = vector.extract_strided_slice %26 {offsets = [0, 24], sizes = [16, 8], strides = [1, 1]} : vector<16x128xf32> to vector<16x8xf32>
    %91 = vector.extract_strided_slice %26 {offsets = [0, 56], sizes = [16, 8], strides = [1, 1]} : vector<16x128xf32> to vector<16x8xf32>
    %92 = vector.extract_strided_slice %26 {offsets = [0, 88], sizes = [16, 8], strides = [1, 1]} : vector<16x128xf32> to vector<16x8xf32>
    %93 = vector.shape_cast %90 : vector<16x8xf32> to vector<2x8x8xf32>
    %94 = vector.shape_cast %91 : vector<16x8xf32> to vector<2x8x8xf32>
    %95 = vector.shape_cast %92 : vector<16x8xf32> to vector<2x8x8xf32>
    "tpu.trace_start"() <{level = 10 : i32, message = "bld,bmd->blm"}> : () -> ()
    %cst_25 = arith.constant dense<0.000000e+00> : vector<2x8x8xf32>
    %96 = tpu.matmul %93, %94, %cst_25 {dimension_numbers = #tpu.dot_dimension_numbers<[2], [2], [1], [1], [0, 0, 0, 1, 1, 1], [0], [0]>} : vector<2x8x8xf32>, vector<2x8x8xf32>, vector<2x8x8xf32> -> vector<2x8x8xf32>
    "tpu.trace_stop"() : () -> ()
    %cst_26 = arith.constant 0.353553385 : f32
    %97 = vector.broadcast %cst_26 : f32 to vector<2x8x8xf32>
    %98 = arith.mulf %96, %97 : vector<2x8x8xf32>
    %cst_27 = arith.constant dense<0xFF800000> : vector<2x8xf32>
    %99 = vector.multi_reduction <maximumf>, %98, %cst_27 [2] : vector<2x8x8xf32> to vector<2x8xf32>
    %100 = vector.shape_cast %99 : vector<2x8xf32> to vector<2x8x1xf32>
    %101 = vector.broadcast %100 : vector<2x8x1xf32> to vector<2x8x8xf32>
    %102 = arith.subf %98, %101 : vector<2x8x8xf32>
    %103 = math.exp %102 : vector<2x8x8xf32>
    %cst_28 = arith.constant dense<0.000000e+00> : vector<2x8xf32>
    %104 = vector.multi_reduction <add>, %103, %cst_28 [2] : vector<2x8x8xf32> to vector<2x8xf32>
    %105 = vector.shape_cast %104 : vector<2x8xf32> to vector<2x8x1xf32>
    %106 = tpu.reciprocal %105 {approx = true} : vector<2x8x1xf32> -> vector<2x8x1xf32>
    %107 = vector.broadcast %106 : vector<2x8x1xf32> to vector<2x8x8xf32>
    %108 = arith.mulf %103, %107 : vector<2x8x8xf32>
    "tpu.trace_start"() <{level = 10 : i32, message = "blm,bmd->bld"}> : () -> ()
    %cst_29 = arith.constant dense<0.000000e+00> : vector<2x8x8xf32>
    %109 = tpu.matmul %108, %95, %cst_29 {dimension_numbers = #tpu.dot_dimension_numbers<[2], [1], [1], [2], [0, 0, 0, 1, 1, 2], [0], [0]>} : vector<2x8x8xf32>, vector<2x8x8xf32>, vector<2x8x8xf32> -> vector<2x8x8xf32>
    "tpu.trace_stop"() : () -> ()
    %110 = vector.shape_cast %109 : vector<2x8x8xf32> to vector<16x8xf32>
    %111 = tpu.concatenate %47, %68, %89, %110 in 1 : vector<16x8xf32>, vector<16x8xf32>, vector<16x8xf32>, vector<16x8xf32> -> vector<16x32xf32>
    %112 = vector.extract_strided_slice %14 {offsets = [0, 96], sizes = [32, 32], strides = [1, 1]} : vector<32x128xf32> to vector<32x32xf32>
    %cst_30 = arith.constant dense<0.000000e+00> : vector<16x32xf32>
    %113 = tpu.matmul %111, %112, %cst_30 {dimension_numbers = #tpu.dot_dimension_numbers<[1], [0], [0], [1], [0, 0, 1, 1], [], []>} : vector<16x32xf32>, vector<32x32xf32>, vector<16x32xf32> -> vector<16x32xf32>
    %114 = vector.broadcast %18 : vector<1x32xf32> to vector<16x32xf32>
    %115 = arith.addf %113, %114 : vector<16x32xf32>
    %116 = arith.addf %11, %115 : vector<16x32xf32>
    %cst_31 = arith.constant dense<0.000000e+00> : vector<16xf32>
    %117 = vector.multi_reduction <add>, %116, %cst_31 [1] : vector<16x32xf32> to vector<16xf32>
    %118 = vector.shape_cast %117 : vector<16xf32> to vector<16x1xf32>
    %cst_32 = arith.constant 3.200000e+01 : f32
    %119 = vector.broadcast %cst_32 : f32 to vector<16x1xf32>
    %120 = arith.divf %118, %119 : vector<16x1xf32>
    %121 = vector.broadcast %120 : vector<16x1xf32> to vector<16x32xf32>
    %122 = arith.subf %116, %121 : vector<16x32xf32>
    %123 = arith.mulf %122, %122 : vector<16x32xf32>
    %cst_33 = arith.constant dense<0.000000e+00> : vector<16xf32>
    %124 = vector.multi_reduction <add>, %123, %cst_33 [1] : vector<16x32xf32> to vector<16xf32>
    %125 = vector.shape_cast %124 : vector<16xf32> to vector<16x1xf32>
    %cst_34 = arith.constant 3.200000e+01 : f32
    %126 = vector.broadcast %cst_34 : f32 to vector<16x1xf32>
    %127 = arith.divf %125, %126 : vector<16x1xf32>
    %128 = vector.broadcast %120 : vector<16x1xf32> to vector<16x32xf32>
    %129 = arith.subf %116, %128 : vector<16x32xf32>
    %cst_35 = arith.constant 9.99999974E-6 : f32
    %130 = vector.broadcast %cst_35 : f32 to vector<16x1xf32>
    %131 = arith.addf %127, %130 : vector<16x1xf32>
    %132 = math.rsqrt %131 : vector<16x1xf32>
    %133 = vector.broadcast %132 : vector<16x1xf32> to vector<16x32xf32>
    %134 = arith.mulf %129, %133 : vector<16x32xf32>
    %135 = vector.broadcast %19 : vector<1x32xf32> to vector<16x32xf32>
    %136 = arith.mulf %134, %135 : vector<16x32xf32>
    %137 = vector.broadcast %20 : vector<1x32xf32> to vector<16x32xf32>
    %138 = arith.addf %136, %137 : vector<16x32xf32>
    %c0_36 = arith.constant 0 : index
    %c0_37 = arith.constant 0 : index
    %c0_38 = arith.constant 0 : index
    %139 = vector.load %arg3[%c0_36, %c0_37, %c0_38] : memref<2x40x128xf32, #tpu.memory_space<vmem>>, vector<1x40x128xf32>
    %140 = vector.shape_cast %139 : vector<1x40x128xf32> to vector<40x128xf32>
    %141 = vector.extract_strided_slice %140 {offsets = [0, 0], sizes = [32, 128], strides = [1, 1]} : vector<40x128xf32> to vector<32x128xf32>
    %142 = vector.extract_strided_slice %140 {offsets = [32, 0], sizes = [1, 128], strides = [1, 1]} : vector<40x128xf32> to vector<1x128xf32>
    %c0_39 = arith.constant 0 : index
    %c0_40 = arith.constant 0 : index
    %c0_41 = arith.constant 0 : index
    %143 = vector.load %arg4[%c0_39, %c0_40, %c0_41] : memref<2x128x32xf32, #tpu.memory_space<vmem>>, vector<1x128x32xf32>
    %144 = vector.shape_cast %143 : vector<1x128x32xf32> to vector<128x32xf32>
    %cst_42 = arith.constant dense<0.000000e+00> : vector<16x128xf32>
    %145 = tpu.matmul %138, %141, %cst_42 {dimension_numbers = #tpu.dot_dimension_numbers<[1], [0], [0], [1], [0, 0, 1, 1], [], []>} : vector<16x32xf32>, vector<32x128xf32>, vector<16x128xf32> -> vector<16x128xf32>
    %146 = vector.broadcast %142 : vector<1x128xf32> to vector<16x128xf32>
    %147 = arith.addf %145, %146 : vector<16x128xf32>
    %cst_43 = arith.constant 0.000000e+00 : f32
    %148 = vector.broadcast %cst_43 : f32 to vector<16x128xf32>
    %149 = arith.maximumf %147, %148 : vector<16x128xf32>
    %cst_44 = arith.constant dense<0.000000e+00> : vector<16x32xf32>
    %150 = tpu.matmul %149, %144, %cst_44 {dimension_numbers = #tpu.dot_dimension_numbers<[1], [0], [0], [1], [0, 0, 1, 1], [], []>} : vector<16x128xf32>, vector<128x32xf32>, vector<16x32xf32> -> vector<16x32xf32>
    %151 = vector.broadcast %21 : vector<1x32xf32> to vector<16x32xf32>
    %152 = arith.addf %150, %151 : vector<16x32xf32>
    %153 = arith.addf %138, %152 : vector<16x32xf32>
    %cst_45 = arith.constant dense<0.000000e+00> : vector<16xf32>
    %154 = vector.multi_reduction <add>, %153, %cst_45 [1] : vector<16x32xf32> to vector<16xf32>
    %155 = vector.shape_cast %154 : vector<16xf32> to vector<16x1xf32>
    %cst_46 = arith.constant 3.200000e+01 : f32
    %156 = vector.broadcast %cst_46 : f32 to vector<16x1xf32>
    %157 = arith.divf %155, %156 : vector<16x1xf32>
    %158 = vector.broadcast %157 : vector<16x1xf32> to vector<16x32xf32>
    %159 = arith.subf %153, %158 : vector<16x32xf32>
    %160 = arith.mulf %159, %159 : vector<16x32xf32>
    %cst_47 = arith.constant dense<0.000000e+00> : vector<16xf32>
    %161 = vector.multi_reduction <add>, %160, %cst_47 [1] : vector<16x32xf32> to vector<16xf32>
    %162 = vector.shape_cast %161 : vector<16xf32> to vector<16x1xf32>
    %cst_48 = arith.constant 3.200000e+01 : f32
    %163 = vector.broadcast %cst_48 : f32 to vector<16x1xf32>
    %164 = arith.divf %162, %163 : vector<16x1xf32>
    %165 = vector.broadcast %157 : vector<16x1xf32> to vector<16x32xf32>
    %166 = arith.subf %153, %165 : vector<16x32xf32>
    %cst_49 = arith.constant 9.99999974E-6 : f32
    %167 = vector.broadcast %cst_49 : f32 to vector<16x1xf32>
    %168 = arith.addf %164, %167 : vector<16x1xf32>
    %169 = math.rsqrt %168 : vector<16x1xf32>
    %170 = vector.broadcast %169 : vector<16x1xf32> to vector<16x32xf32>
    %171 = arith.mulf %166, %170 : vector<16x32xf32>
    %172 = vector.broadcast %22 : vector<1x32xf32> to vector<16x32xf32>
    %173 = arith.mulf %171, %172 : vector<16x32xf32>
    %174 = vector.broadcast %23 : vector<1x32xf32> to vector<16x32xf32>
    %175 = arith.addf %173, %174 : vector<16x32xf32>
    %c1 = arith.constant 1 : index
    %c0_50 = arith.constant 0 : index
    %c0_51 = arith.constant 0 : index
    %176 = vector.load %arg2[%c1, %c0_50, %c0_51] : memref<2x40x128xf32, #tpu.memory_space<vmem>>, vector<1x40x128xf32>
    %177 = vector.shape_cast %176 : vector<1x40x128xf32> to vector<40x128xf32>
    %178 = vector.extract_strided_slice %177 {offsets = [0, 0], sizes = [32, 128], strides = [1, 1]} : vector<40x128xf32> to vector<32x128xf32>
    %179 = vector.extract_strided_slice %177 {offsets = [32, 0], sizes = [1, 128], strides = [1, 1]} : vector<40x128xf32> to vector<1x128xf32>
    %c1_52 = arith.constant 1 : index
    %c0_53 = arith.constant 0 : index
    %c0_54 = arith.constant 0 : index
    %180 = vector.load %arg5[%c1_52, %c0_53, %c0_54] : memref<2x8x32xf32, #tpu.memory_space<vmem>>, vector<1x8x32xf32>
    %181 = vector.shape_cast %180 : vector<1x8x32xf32> to vector<8x32xf32>
    %182 = vector.extract_strided_slice %181 {offsets = [0, 0], sizes = [1, 32], strides = [1, 1]} : vector<8x32xf32> to vector<1x32xf32>
    %183 = vector.extract_strided_slice %181 {offsets = [1, 0], sizes = [1, 32], strides = [1, 1]} : vector<8x32xf32> to vector<1x32xf32>
    %184 = vector.extract_strided_slice %181 {offsets = [2, 0], sizes = [1, 32], strides = [1, 1]} : vector<8x32xf32> to vector<1x32xf32>
    %185 = vector.extract_strided_slice %181 {offsets = [3, 0], sizes = [1, 32], strides = [1, 1]} : vector<8x32xf32> to vector<1x32xf32>
    %186 = vector.extract_strided_slice %181 {offsets = [4, 0], sizes = [1, 32], strides = [1, 1]} : vector<8x32xf32> to vector<1x32xf32>
    %187 = vector.extract_strided_slice %181 {offsets = [5, 0], sizes = [1, 32], strides = [1, 1]} : vector<8x32xf32> to vector<1x32xf32>
    %cst_55 = arith.constant dense<0.000000e+00> : vector<16x128xf32>
    %188 = tpu.matmul %175, %178, %cst_55 {dimension_numbers = #tpu.dot_dimension_numbers<[1], [0], [0], [1], [0, 0, 1, 1], [], []>} : vector<16x32xf32>, vector<32x128xf32>, vector<16x128xf32> -> vector<16x128xf32>
    %189 = vector.broadcast %179 : vector<1x128xf32> to vector<16x128xf32>
    %190 = arith.addf %188, %189 : vector<16x128xf32>
    %191 = vector.extract_strided_slice %190 {offsets = [0, 0], sizes = [16, 8], strides = [1, 1]} : vector<16x128xf32> to vector<16x8xf32>
    %192 = vector.extract_strided_slice %190 {offsets = [0, 32], sizes = [16, 8], strides = [1, 1]} : vector<16x128xf32> to vector<16x8xf32>
    %193 = vector.extract_strided_slice %190 {offsets = [0, 64], sizes = [16, 8], strides = [1, 1]} : vector<16x128xf32> to vector<16x8xf32>
    %194 = vector.shape_cast %191 : vector<16x8xf32> to vector<2x8x8xf32>
    %195 = vector.shape_cast %192 : vector<16x8xf32> to vector<2x8x8xf32>
    %196 = vector.shape_cast %193 : vector<16x8xf32> to vector<2x8x8xf32>
    "tpu.trace_start"() <{level = 10 : i32, message = "bld,bmd->blm"}> : () -> ()
    %cst_56 = arith.constant dense<0.000000e+00> : vector<2x8x8xf32>
    %197 = tpu.matmul %194, %195, %cst_56 {dimension_numbers = #tpu.dot_dimension_numbers<[2], [2], [1], [1], [0, 0, 0, 1, 1, 1], [0], [0]>} : vector<2x8x8xf32>, vector<2x8x8xf32>, vector<2x8x8xf32> -> vector<2x8x8xf32>
    "tpu.trace_stop"() : () -> ()
    %cst_57 = arith.constant 0.353553385 : f32
    %198 = vector.broadcast %cst_57 : f32 to vector<2x8x8xf32>
    %199 = arith.mulf %197, %198 : vector<2x8x8xf32>
    %cst_58 = arith.constant dense<0xFF800000> : vector<2x8xf32>
    %200 = vector.multi_reduction <maximumf>, %199, %cst_58 [2] : vector<2x8x8xf32> to vector<2x8xf32>
    %201 = vector.shape_cast %200 : vector<2x8xf32> to vector<2x8x1xf32>
    %202 = vector.broadcast %201 : vector<2x8x1xf32> to vector<2x8x8xf32>
    %203 = arith.subf %199, %202 : vector<2x8x8xf32>
    %204 = math.exp %203 : vector<2x8x8xf32>
    %cst_59 = arith.constant dense<0.000000e+00> : vector<2x8xf32>
    %205 = vector.multi_reduction <add>, %204, %cst_59 [2] : vector<2x8x8xf32> to vector<2x8xf32>
    %206 = vector.shape_cast %205 : vector<2x8xf32> to vector<2x8x1xf32>
    %207 = tpu.reciprocal %206 {approx = true} : vector<2x8x1xf32> -> vector<2x8x1xf32>
    %208 = vector.broadcast %207 : vector<2x8x1xf32> to vector<2x8x8xf32>
    %209 = arith.mulf %204, %208 : vector<2x8x8xf32>
    "tpu.trace_start"() <{level = 10 : i32, message = "blm,bmd->bld"}> : () -> ()
    %cst_60 = arith.constant dense<0.000000e+00> : vector<2x8x8xf32>
    %210 = tpu.matmul %209, %196, %cst_60 {dimension_numbers = #tpu.dot_dimension_numbers<[2], [1], [1], [2], [0, 0, 0, 1, 1, 2], [0], [0]>} : vector<2x8x8xf32>, vector<2x8x8xf32>, vector<2x8x8xf32> -> vector<2x8x8xf32>
    "tpu.trace_stop"() : () -> ()
    %211 = vector.shape_cast %210 : vector<2x8x8xf32> to vector<16x8xf32>
    %212 = vector.extract_strided_slice %190 {offsets = [0, 8], sizes = [16, 8], strides = [1, 1]} : vector<16x128xf32> to vector<16x8xf32>
    %213 = vector.extract_strided_slice %190 {offsets = [0, 40], sizes = [16, 8], strides = [1, 1]} : vector<16x128xf32> to vector<16x8xf32>
    %214 = vector.extract_strided_slice %190 {offsets = [0, 72], sizes = [16, 8], strides = [1, 1]} : vector<16x128xf32> to vector<16x8xf32>
    %215 = vector.shape_cast %212 : vector<16x8xf32> to vector<2x8x8xf32>
    %216 = vector.shape_cast %213 : vector<16x8xf32> to vector<2x8x8xf32>
    %217 = vector.shape_cast %214 : vector<16x8xf32> to vector<2x8x8xf32>
    "tpu.trace_start"() <{level = 10 : i32, message = "bld,bmd->blm"}> : () -> ()
    %cst_61 = arith.constant dense<0.000000e+00> : vector<2x8x8xf32>
    %218 = tpu.matmul %215, %216, %cst_61 {dimension_numbers = #tpu.dot_dimension_numbers<[2], [2], [1], [1], [0, 0, 0, 1, 1, 1], [0], [0]>} : vector<2x8x8xf32>, vector<2x8x8xf32>, vector<2x8x8xf32> -> vector<2x8x8xf32>
    "tpu.trace_stop"() : () -> ()
    %cst_62 = arith.constant 0.353553385 : f32
    %219 = vector.broadcast %cst_62 : f32 to vector<2x8x8xf32>
    %220 = arith.mulf %218, %219 : vector<2x8x8xf32>
    %cst_63 = arith.constant dense<0xFF800000> : vector<2x8xf32>
    %221 = vector.multi_reduction <maximumf>, %220, %cst_63 [2] : vector<2x8x8xf32> to vector<2x8xf32>
    %222 = vector.shape_cast %221 : vector<2x8xf32> to vector<2x8x1xf32>
    %223 = vector.broadcast %222 : vector<2x8x1xf32> to vector<2x8x8xf32>
    %224 = arith.subf %220, %223 : vector<2x8x8xf32>
    %225 = math.exp %224 : vector<2x8x8xf32>
    %cst_64 = arith.constant dense<0.000000e+00> : vector<2x8xf32>
    %226 = vector.multi_reduction <add>, %225, %cst_64 [2] : vector<2x8x8xf32> to vector<2x8xf32>
    %227 = vector.shape_cast %226 : vector<2x8xf32> to vector<2x8x1xf32>
    %228 = tpu.reciprocal %227 {approx = true} : vector<2x8x1xf32> -> vector<2x8x1xf32>
    %229 = vector.broadcast %228 : vector<2x8x1xf32> to vector<2x8x8xf32>
    %230 = arith.mulf %225, %229 : vector<2x8x8xf32>
    "tpu.trace_start"() <{level = 10 : i32, message = "blm,bmd->bld"}> : () -> ()
    %cst_65 = arith.constant dense<0.000000e+00> : vector<2x8x8xf32>
    %231 = tpu.matmul %230, %217, %cst_65 {dimension_numbers = #tpu.dot_dimension_numbers<[2], [1], [1], [2], [0, 0, 0, 1, 1, 2], [0], [0]>} : vector<2x8x8xf32>, vector<2x8x8xf32>, vector<2x8x8xf32> -> vector<2x8x8xf32>
    "tpu.trace_stop"() : () -> ()
    %232 = vector.shape_cast %231 : vector<2x8x8xf32> to vector<16x8xf32>
    %233 = vector.extract_strided_slice %190 {offsets = [0, 16], sizes = [16, 8], strides = [1, 1]} : vector<16x128xf32> to vector<16x8xf32>
    %234 = vector.extract_strided_slice %190 {offsets = [0, 48], sizes = [16, 8], strides = [1, 1]} : vector<16x128xf32> to vector<16x8xf32>
    %235 = vector.extract_strided_slice %190 {offsets = [0, 80], sizes = [16, 8], strides = [1, 1]} : vector<16x128xf32> to vector<16x8xf32>
    %236 = vector.shape_cast %233 : vector<16x8xf32> to vector<2x8x8xf32>
    %237 = vector.shape_cast %234 : vector<16x8xf32> to vector<2x8x8xf32>
    %238 = vector.shape_cast %235 : vector<16x8xf32> to vector<2x8x8xf32>
    "tpu.trace_start"() <{level = 10 : i32, message = "bld,bmd->blm"}> : () -> ()
    %cst_66 = arith.constant dense<0.000000e+00> : vector<2x8x8xf32>
    %239 = tpu.matmul %236, %237, %cst_66 {dimension_numbers = #tpu.dot_dimension_numbers<[2], [2], [1], [1], [0, 0, 0, 1, 1, 1], [0], [0]>} : vector<2x8x8xf32>, vector<2x8x8xf32>, vector<2x8x8xf32> -> vector<2x8x8xf32>
    "tpu.trace_stop"() : () -> ()
    %cst_67 = arith.constant 0.353553385 : f32
    %240 = vector.broadcast %cst_67 : f32 to vector<2x8x8xf32>
    %241 = arith.mulf %239, %240 : vector<2x8x8xf32>
    %cst_68 = arith.constant dense<0xFF800000> : vector<2x8xf32>
    %242 = vector.multi_reduction <maximumf>, %241, %cst_68 [2] : vector<2x8x8xf32> to vector<2x8xf32>
    %243 = vector.shape_cast %242 : vector<2x8xf32> to vector<2x8x1xf32>
    %244 = vector.broadcast %243 : vector<2x8x1xf32> to vector<2x8x8xf32>
    %245 = arith.subf %241, %244 : vector<2x8x8xf32>
    %246 = math.exp %245 : vector<2x8x8xf32>
    %cst_69 = arith.constant dense<0.000000e+00> : vector<2x8xf32>
    %247 = vector.multi_reduction <add>, %246, %cst_69 [2] : vector<2x8x8xf32> to vector<2x8xf32>
    %248 = vector.shape_cast %247 : vector<2x8xf32> to vector<2x8x1xf32>
    %249 = tpu.reciprocal %248 {approx = true} : vector<2x8x1xf32> -> vector<2x8x1xf32>
    %250 = vector.broadcast %249 : vector<2x8x1xf32> to vector<2x8x8xf32>
    %251 = arith.mulf %246, %250 : vector<2x8x8xf32>
    "tpu.trace_start"() <{level = 10 : i32, message = "blm,bmd->bld"}> : () -> ()
    %cst_70 = arith.constant dense<0.000000e+00> : vector<2x8x8xf32>
    %252 = tpu.matmul %251, %238, %cst_70 {dimension_numbers = #tpu.dot_dimension_numbers<[2], [1], [1], [2], [0, 0, 0, 1, 1, 2], [0], [0]>} : vector<2x8x8xf32>, vector<2x8x8xf32>, vector<2x8x8xf32> -> vector<2x8x8xf32>
    "tpu.trace_stop"() : () -> ()
    %253 = vector.shape_cast %252 : vector<2x8x8xf32> to vector<16x8xf32>
    %254 = vector.extract_strided_slice %190 {offsets = [0, 24], sizes = [16, 8], strides = [1, 1]} : vector<16x128xf32> to vector<16x8xf32>
    %255 = vector.extract_strided_slice %190 {offsets = [0, 56], sizes = [16, 8], strides = [1, 1]} : vector<16x128xf32> to vector<16x8xf32>
    %256 = vector.extract_strided_slice %190 {offsets = [0, 88], sizes = [16, 8], strides = [1, 1]} : vector<16x128xf32> to vector<16x8xf32>
    %257 = vector.shape_cast %254 : vector<16x8xf32> to vector<2x8x8xf32>
    %258 = vector.shape_cast %255 : vector<16x8xf32> to vector<2x8x8xf32>
    %259 = vector.shape_cast %256 : vector<16x8xf32> to vector<2x8x8xf32>
    "tpu.trace_start"() <{level = 10 : i32, message = "bld,bmd->blm"}> : () -> ()
    %cst_71 = arith.constant dense<0.000000e+00> : vector<2x8x8xf32>
    %260 = tpu.matmul %257, %258, %cst_71 {dimension_numbers = #tpu.dot_dimension_numbers<[2], [2], [1], [1], [0, 0, 0, 1, 1, 1], [0], [0]>} : vector<2x8x8xf32>, vector<2x8x8xf32>, vector<2x8x8xf32> -> vector<2x8x8xf32>
    "tpu.trace_stop"() : () -> ()
    %cst_72 = arith.constant 0.353553385 : f32
    %261 = vector.broadcast %cst_72 : f32 to vector<2x8x8xf32>
    %262 = arith.mulf %260, %261 : vector<2x8x8xf32>
    %cst_73 = arith.constant dense<0xFF800000> : vector<2x8xf32>
    %263 = vector.multi_reduction <maximumf>, %262, %cst_73 [2] : vector<2x8x8xf32> to vector<2x8xf32>
    %264 = vector.shape_cast %263 : vector<2x8xf32> to vector<2x8x1xf32>
    %265 = vector.broadcast %264 : vector<2x8x1xf32> to vector<2x8x8xf32>
    %266 = arith.subf %262, %265 : vector<2x8x8xf32>
    %267 = math.exp %266 : vector<2x8x8xf32>
    %cst_74 = arith.constant dense<0.000000e+00> : vector<2x8xf32>
    %268 = vector.multi_reduction <add>, %267, %cst_74 [2] : vector<2x8x8xf32> to vector<2x8xf32>
    %269 = vector.shape_cast %268 : vector<2x8xf32> to vector<2x8x1xf32>
    %270 = tpu.reciprocal %269 {approx = true} : vector<2x8x1xf32> -> vector<2x8x1xf32>
    %271 = vector.broadcast %270 : vector<2x8x1xf32> to vector<2x8x8xf32>
    %272 = arith.mulf %267, %271 : vector<2x8x8xf32>
    "tpu.trace_start"() <{level = 10 : i32, message = "blm,bmd->bld"}> : () -> ()
    %cst_75 = arith.constant dense<0.000000e+00> : vector<2x8x8xf32>
    %273 = tpu.matmul %272, %259, %cst_75 {dimension_numbers = #tpu.dot_dimension_numbers<[2], [1], [1], [2], [0, 0, 0, 1, 1, 2], [0], [0]>} : vector<2x8x8xf32>, vector<2x8x8xf32>, vector<2x8x8xf32> -> vector<2x8x8xf32>
    "tpu.trace_stop"() : () -> ()
    %274 = vector.shape_cast %273 : vector<2x8x8xf32> to vector<16x8xf32>
    %275 = tpu.concatenate %211, %232, %253, %274 in 1 : vector<16x8xf32>, vector<16x8xf32>, vector<16x8xf32>, vector<16x8xf32> -> vector<16x32xf32>
    %276 = vector.extract_strided_slice %178 {offsets = [0, 96], sizes = [32, 32], strides = [1, 1]} : vector<32x128xf32> to vector<32x32xf32>
    %cst_76 = arith.constant dense<0.000000e+00> : vector<16x32xf32>
    %277 = tpu.matmul %275, %276, %cst_76 {dimension_numbers = #tpu.dot_dimension_numbers<[1], [0], [0], [1], [0, 0, 1, 1], [], []>} : vector<16x32xf32>, vector<32x32xf32>, vector<16x32xf32> -> vector<16x32xf32>
    %278 = vector.broadcast %182 : vector<1x32xf32> to vector<16x32xf32>
    %279 = arith.addf %277, %278 : vector<16x32xf32>
    %280 = arith.addf %175, %279 : vector<16x32xf32>
    %cst_77 = arith.constant dense<0.000000e+00> : vector<16xf32>
    %281 = vector.multi_reduction <add>, %280, %cst_77 [1] : vector<16x32xf32> to vector<16xf32>
    %282 = vector.shape_cast %281 : vector<16xf32> to vector<16x1xf32>
    %cst_78 = arith.constant 3.200000e+01 : f32
    %283 = vector.broadcast %cst_78 : f32 to vector<16x1xf32>
    %284 = arith.divf %282, %283 : vector<16x1xf32>
    %285 = vector.broadcast %284 : vector<16x1xf32> to vector<16x32xf32>
    %286 = arith.subf %280, %285 : vector<16x32xf32>
    %287 = arith.mulf %286, %286 : vector<16x32xf32>
    %cst_79 = arith.constant dense<0.000000e+00> : vector<16xf32>
    %288 = vector.multi_reduction <add>, %287, %cst_79 [1] : vector<16x32xf32> to vector<16xf32>
    %289 = vector.shape_cast %288 : vector<16xf32> to vector<16x1xf32>
    %cst_80 = arith.constant 3.200000e+01 : f32
    %290 = vector.broadcast %cst_80 : f32 to vector<16x1xf32>
    %291 = arith.divf %289, %290 : vector<16x1xf32>
    %292 = vector.broadcast %284 : vector<16x1xf32> to vector<16x32xf32>
    %293 = arith.subf %280, %292 : vector<16x32xf32>
    %cst_81 = arith.constant 9.99999974E-6 : f32
    %294 = vector.broadcast %cst_81 : f32 to vector<16x1xf32>
    %295 = arith.addf %291, %294 : vector<16x1xf32>
    %296 = math.rsqrt %295 : vector<16x1xf32>
    %297 = vector.broadcast %296 : vector<16x1xf32> to vector<16x32xf32>
    %298 = arith.mulf %293, %297 : vector<16x32xf32>
    %299 = vector.broadcast %183 : vector<1x32xf32> to vector<16x32xf32>
    %300 = arith.mulf %298, %299 : vector<16x32xf32>
    %301 = vector.broadcast %184 : vector<1x32xf32> to vector<16x32xf32>
    %302 = arith.addf %300, %301 : vector<16x32xf32>
    %c1_82 = arith.constant 1 : index
    %c0_83 = arith.constant 0 : index
    %c0_84 = arith.constant 0 : index
    %303 = vector.load %arg3[%c1_82, %c0_83, %c0_84] : memref<2x40x128xf32, #tpu.memory_space<vmem>>, vector<1x40x128xf32>
    %304 = vector.shape_cast %303 : vector<1x40x128xf32> to vector<40x128xf32>
    %305 = vector.extract_strided_slice %304 {offsets = [0, 0], sizes = [32, 128], strides = [1, 1]} : vector<40x128xf32> to vector<32x128xf32>
    %306 = vector.extract_strided_slice %304 {offsets = [32, 0], sizes = [1, 128], strides = [1, 1]} : vector<40x128xf32> to vector<1x128xf32>
    %c1_85 = arith.constant 1 : index
    %c0_86 = arith.constant 0 : index
    %c0_87 = arith.constant 0 : index
    %307 = vector.load %arg4[%c1_85, %c0_86, %c0_87] : memref<2x128x32xf32, #tpu.memory_space<vmem>>, vector<1x128x32xf32>
    %308 = vector.shape_cast %307 : vector<1x128x32xf32> to vector<128x32xf32>
    %cst_88 = arith.constant dense<0.000000e+00> : vector<16x128xf32>
    %309 = tpu.matmul %302, %305, %cst_88 {dimension_numbers = #tpu.dot_dimension_numbers<[1], [0], [0], [1], [0, 0, 1, 1], [], []>} : vector<16x32xf32>, vector<32x128xf32>, vector<16x128xf32> -> vector<16x128xf32>
    %310 = vector.broadcast %306 : vector<1x128xf32> to vector<16x128xf32>
    %311 = arith.addf %309, %310 : vector<16x128xf32>
    %cst_89 = arith.constant 0.000000e+00 : f32
    %312 = vector.broadcast %cst_89 : f32 to vector<16x128xf32>
    %313 = arith.maximumf %311, %312 : vector<16x128xf32>
    %cst_90 = arith.constant dense<0.000000e+00> : vector<16x32xf32>
    %314 = tpu.matmul %313, %308, %cst_90 {dimension_numbers = #tpu.dot_dimension_numbers<[1], [0], [0], [1], [0, 0, 1, 1], [], []>} : vector<16x128xf32>, vector<128x32xf32>, vector<16x32xf32> -> vector<16x32xf32>
    %315 = vector.broadcast %185 : vector<1x32xf32> to vector<16x32xf32>
    %316 = arith.addf %314, %315 : vector<16x32xf32>
    %317 = arith.addf %302, %316 : vector<16x32xf32>
    %cst_91 = arith.constant dense<0.000000e+00> : vector<16xf32>
    %318 = vector.multi_reduction <add>, %317, %cst_91 [1] : vector<16x32xf32> to vector<16xf32>
    %319 = vector.shape_cast %318 : vector<16xf32> to vector<16x1xf32>
    %cst_92 = arith.constant 3.200000e+01 : f32
    %320 = vector.broadcast %cst_92 : f32 to vector<16x1xf32>
    %321 = arith.divf %319, %320 : vector<16x1xf32>
    %322 = vector.broadcast %321 : vector<16x1xf32> to vector<16x32xf32>
    %323 = arith.subf %317, %322 : vector<16x32xf32>
    %324 = arith.mulf %323, %323 : vector<16x32xf32>
    %cst_93 = arith.constant dense<0.000000e+00> : vector<16xf32>
    %325 = vector.multi_reduction <add>, %324, %cst_93 [1] : vector<16x32xf32> to vector<16xf32>
    %326 = vector.shape_cast %325 : vector<16xf32> to vector<16x1xf32>
    %cst_94 = arith.constant 3.200000e+01 : f32
    %327 = vector.broadcast %cst_94 : f32 to vector<16x1xf32>
    %328 = arith.divf %326, %327 : vector<16x1xf32>
    %329 = vector.broadcast %321 : vector<16x1xf32> to vector<16x32xf32>
    %330 = arith.subf %317, %329 : vector<16x32xf32>
    %cst_95 = arith.constant 9.99999974E-6 : f32
    %331 = vector.broadcast %cst_95 : f32 to vector<16x1xf32>
    %332 = arith.addf %328, %331 : vector<16x1xf32>
    %333 = math.rsqrt %332 : vector<16x1xf32>
    %334 = vector.broadcast %333 : vector<16x1xf32> to vector<16x32xf32>
    %335 = arith.mulf %330, %334 : vector<16x32xf32>
    %336 = vector.broadcast %186 : vector<1x32xf32> to vector<16x32xf32>
    %337 = arith.mulf %335, %336 : vector<16x32xf32>
    %338 = vector.broadcast %187 : vector<1x32xf32> to vector<16x32xf32>
    %339 = arith.addf %337, %338 : vector<16x32xf32>
    %c0_96 = arith.constant 0 : index
    %c0_97 = arith.constant 0 : index
    %340 = vector.load %arg6[%c0_96, %c0_97] : memref<40x128xf32, #tpu.memory_space<vmem>>, vector<40x128xf32>
    %341 = vector.extract_strided_slice %340 {offsets = [0, 0], sizes = [32, 128], strides = [1, 1]} : vector<40x128xf32> to vector<32x128xf32>
    %342 = vector.extract_strided_slice %340 {offsets = [32, 0], sizes = [1, 128], strides = [1, 1]} : vector<40x128xf32> to vector<1x128xf32>
    %cst_98 = arith.constant dense<0.000000e+00> : vector<16x128xf32>
    %343 = tpu.matmul %339, %341, %cst_98 {dimension_numbers = #tpu.dot_dimension_numbers<[1], [0], [0], [1], [0, 0, 1, 1], [], []>} : vector<16x32xf32>, vector<32x128xf32>, vector<16x128xf32> -> vector<16x128xf32>
    %344 = vector.broadcast %342 : vector<1x128xf32> to vector<16x128xf32>
    %345 = arith.addf %343, %344 : vector<16x128xf32>
    %c0_99 = arith.constant 0 : index
    %c0_100 = arith.constant 0 : index
    %346 = vector.load %arg7[%c0_99, %c0_100] : memref<16x128xf32, #tpu.memory_space<vmem>>, vector<16x128xf32>
    tpu.vector_store %arg7[%c0_99, %c0_100], %345 {strides = array<i32>} : memref<16x128xf32, #tpu.memory_space<vmem>>, vector<16x128xf32>,
    return
  }
}

</mosaic_0001>

<bundles_post_ra>
// kernel: encoder_forward.1
= control target key start
LH: loop header
LB: loop body
LE: loop exit
PB: predicated region body
PF: predicated region fallthrough
CT: control target
= control target key end

     0   :  { %v4733_v2 = vmov 0   ;;  %v4734_v11 = vmov 0.0   ;;  %s5492_s0 = inlined_call_operand.vmem [shape: s32[16,1], index: 0, kind: input, shape index: {}]   ;;  %s5493_s1 = inlined_call_operand.vmem [shape: f32[72,32], index: 1, kind: input, shape index: {}]   ;;  %s5494_s2 = inlined_call_operand.vmem [shape: f32[2,40,128], index: 2, kind: input, shape index: {}]   ;;  %s5495_s3 = inlined_call_operand.vmem [shape: f32[2,40,128], index: 3, kind: input, shape index: {}]   ;;  %s5496_s4 = inlined_call_operand.vmem [shape: f32[2,128,32], index: 4, kind: input, shape index: {}]   ;;  %s5497_s5 = inlined_call_operand.vmem [shape: f32[2,8,32], index: 5, kind: input, shape index: {}]   ;;  %s5498_s6 = inlined_call_operand.vmem [shape: f32[40,128], index: 6, kind: input, shape index: {}]   ;;  %s5499_s7 = inlined_call_operand.hbm [shape: f32[16,128], index: 7, kind: output, shape index: {}]  }
   0x1   :  { %v36_v0 = vld [vmem:[%s5492_s0] sm:$0xff]  ;;  %4608 = vset.pattern.permute.xlu0 %v4733_v2  ;;  %v28_v3 = vld [vmem:[%s5493_s1 + $0x8] sm:$0xff]  ;;  %v29_v4 = vld [vmem:[%s5493_s1 + $0x10] sm:$0xff]  ;;  %4156 = vmatprep.subr.mxu0 %v4734_v11 }
   0x2   :  { %v27_v1 = vld [vmem:[%s5493_s1] sm:$0xff]  ;;  %v30_v5 = vld [vmem:[%s5493_s1 + $0x18] sm:$0xff]  ;;  %41 = vperm.xlu0 %4608, %v36_v0   ;;  %v37_v6 = vld [vmem:[%s5492_s0 + $0x8] sm:$0xff] }
   0x3   :  { %v4452_v7 = vpack.c.bf16 %v28_v3, %v27_v1  ;;  %v4456_v8 = vpack.c.bf16 %v30_v5, %v29_v4  ;;  %v31_v9 = vld [vmem:[%s5493_s1 + $0x20] sm:$0xff]  ;;  %v32_v10 = vld [vmem:[%s5493_s1 + $0x28] sm:$0xff] }
   0x4   :  { %12 = vsyncpa [#allocation3], 0  ;;  %v4460_v12 = vpack.c.bf16 %v32_v10, %v31_v9  ;;  %v33_v13 = vld [vmem:[%s5493_s1 + $0x30] sm:$0xff]  ;;  %v34_v14 = vld [vmem:[%s5493_s1 + $0x38] sm:$0xff]  ;;  %v38_v19 = vlaneseq  ;;  %vm52_vm0 = vcmask 523264   ;;  %vm144_vm3 = vcmask 261120  }
   0x5   :  { %4453 = vmatprep.subr.bf16.mxu1 %v4452_v7  ;;  %v4464_v15 = vpack.c.bf16 %v34_v14, %v33_v13  ;;  %v4827_v16 = vld [vmem:[%s5494_s2] sm:$0xff]  ;;  %v4832_v17 = vld [vmem:[%s5494_s2 + $0x8] sm:$0xff]  ;;  %v4841_v25 = vld [vmem:[%s5494_s2 + $0x10] sm:$0xff]  ;;  %vm4735_vm4 = vmmov 0   ;;  %s4736_s8 = smov 96   ;;  %vm229_vm5 = vcmask 64512  }
   0x6   :  { %4455 = vmatpush3.bf16.msra.mxu1 %v4452_v7  ;;  %44 = vperm.xlu0 %4608, %v37_v6   ;;  %v4468_v18 = vpack.c.bf16 %v4832_v17, %v4827_v16  ;;  %v39_v20 = vand.u32 127, %v38_v19  ;;  %v4846_v26 = vld [vmem:[%s5494_s2 + $0x18] sm:$0xff]  ;;  %v35_v28 = vld [vmem:[%s5493_s1 + $0x40] sm:$0xff]  ;;  %v4862_v33 = vshrl.u32 %v38_v19, 7  ;;  %s4737_s9 = smov 64   ;;  %s4738_s10 = smov 88  }
   0x7   :  { %4457 = vmatprep.subr.bf16.mxu1 %v4456_v8  ;;  %v4472_v27 = vpack.c.bf16 %v4846_v26, %v4841_v25  ;;  %4158 = vmatprep.mubr.msk.f32.mxu0 %vm4735_vm4, %v4734_v11  ;;  %v138_v35 = vld [vmem:[%s5494_s2 + $0x20] sm:$0xff]  ;;  %s4739_s11 = smov 120   ;;  %s4740_s12 = smov 56   ;;  %vm1579_vm6 = vcmask 130048   ;;  %vm1582_vm7 = vcmask 195584  }
   0x8   :  { %v4869_v34 = vsub.s32 0, %v4862_v33  ;;  %s4741_s13 = smov 80   ;;  %s4742_s14 = smov 112  }
   0x9   :  { %s4743_s15 = smov 48   ;;  %s4744_s16 = smov 72  }
   0xa   :  { %4459 = vmatpush3.bf16.msra.mxu1 %v4456_v8  ;;  %v143_v36 = vrot.slane %v138_v35, %v4869_v34  ;;  %s4745_s0 = smov 104   ;;  %s4746_s17 = smov 40  }
   0xb   :  { %4461 = vmatprep.subr.bf16.mxu1 %v4460_v12  ;;  %s4747_s18 = smov 32   ;;  %s4748_s19 = smov 8  }
   0xc   :  { %s4749_s20 = smov 16   ;;  %s4750_s21 = smov 24  }
   0xe   :  { %4463 = vmatpush3.bf16.msra.mxu1 %v4460_v12 }
   0xf   :  { %4465 = vmatprep.subr.bf16.mxu1 %v4464_v15 }
  0x12   :  { %4467 = vmatpush3.bf16.msra.mxu1 %v4464_v15 }
  0x13   :  { %4469 = vmatprep.subr.bf16.mxu1 %v4468_v18 }
  0x81   :  { %v42_v21 = vpop.permute.xlu0 %41 }
  0x82   :  { %vm46_vm1 = vcmp.eq.s32.totalorder %v39_v20, %v42_v21 }
  0x83   :  { %v3881_v22 = vsel %vm46_vm1, 1.0, %v4734_v11 }
  0x84   :  { %4142 = vmatprep.mubr.msk.f32.mxu1 %vm52_vm0, %v3881_v22 }
  0x85   :  { %v45_v23 = vpop.permute.xlu0 %44 }
  0x86   :  { %vm47_vm2 = vcmp.eq.s32.totalorder %v39_v20, %v45_v23 }
  0x87   :  { %v3882_v24 = vsel %vm47_vm2, 1.0, %v4734_v11 }
  0x88   :  { %4143 = vmatmul.mubr.msk.f32.vlgmr.msra.gmra.mrb[0].mxu1 %vm52_vm0, %v3882_v24 }
  0x89   :  { %4471 = vmatpush3.bf16.msra.mxu1 %v4468_v18 }
  0x8a   :  { %4473 = vmatprep.subr.bf16.mxu1 %v4472_v27 }
  0x8d   :  { %4475 = vmatpush3.bf16.msra.mxu1 %v4472_v27 }
  0x8e   :  { %4161 = vmatprep.subr.mxu1 %v4734_v11 }
 0x15b   :  { %v4144_v29 = vpop.f32.mrb[0].mxu1 }
 0x15c   :  { %v125_v30 = vpop.f32.mrb[1].mxu1  ;;  %v4856_v32 = vadd.f32 %v4144_v29, %v35_v28 }
 0x15d   :  { %v4854_v31 = vadd.f32 %v125_v30, %v35_v28 }
 0x15f   :  { %4153 = vmatprep.mubr.msk.f32.mxu1 %vm144_vm3, %v4854_v31 }
 0x160   :  { %4154 = vmatmul.mubr.msk.f32.vlgmr.msra.gmra.mrb[2].mxu1 %vm144_vm3, %v4856_v32 }
 0x161   :  { %4163 = vmatprep.mubr.msk.f32.mxu1 %vm4735_vm4, %v4734_v11 }
 0x233   :  { %v4155_v37 = vpop.f32.mrb[2].mxu1 }
 0x234   :  { %v217_v38 = vpop.f32.mrb[3].mxu1  ;;  %v4879_v40 = vadd.f32 %v4155_v37, %v143_v36 }
 0x235   :  { %v4875_v39 = vadd.f32 %v217_v38, %v143_v36 }
 0x237   :  { %227 = vrot.lane.b32.xlu1 %v4875_v39, %s4736_s8 }
 0x23b   :  { %305 = vrot.lane.b32.xlu1 %v4879_v40, %s4736_s8 }
 0x2a9   :  { %v228_v41 = vpop.permute.xlu1 %227 }
 0x2aa   :  { %4157 = vmatpush3.xpose.msk.msra.mxu0 %vm229_vm5, %v228_v41 }
 0x2ab   :  { %4166 = vmatprep.subr.mxu0 %v4734_v11 }
 0x2ad   :  { %4159 = vmatmul.mubr.msk.f32.vlgmr.msra.gmra.mrb[0].mxu0 %vm229_vm5, %v4875_v39  ;;  %v306_v42 = vpop.permute.xlu1 %305 }
 0x2ae   :  { %4162 = vmatpush3.xpose.msk.msra.mxu1 %vm229_vm5, %v306_v42  ;;  %4168 = vmatprep.mubr.msk.f32.mxu0 %vm4735_vm4, %v4734_v11 }
 0x2af   :  { %4171 = vmatprep.subr.mxu1 %v4734_v11 }
 0x2b1   :  { %4164 = vmatmul.mubr.msk.f32.vlgmr.msra.gmra.mrb[4].mxu1 %vm229_vm5, %v4879_v40 }
 0x2b2   :  { %4173 = vmatprep.mubr.msk.f32.mxu1 %vm4735_vm4, %v4734_v11 }
 0x380   :  { %v300_v43 = vpop.f32.mrb[0].mxu0 }
 0x381   :  { %v381_v44 = vmul.f32 0.35355338, %v300_v43  ;;  %v4160_v45 = vpop.f32.mrb[1].mxu0 }
 0x383   :  { %v383_v46 = vsel %vm229_vm5, %v381_v44, -inf }
 0x384   :  { %384 = vmax.xlane.f32.xlu0 %v383_v46  ;;  %v377_v47 = vpop.f32.mrb[4].mxu1 }
 0x385   :  { %v382_v48 = vmul.f32 0.35355338, %v377_v47  ;;  %v4165_v49 = vpop.f32.mrb[5].mxu1 }
 0x387   :  { %v386_v50 = vsel %vm229_vm5, %v382_v48, -inf }
 0x388   :  { %387 = vmax.xlane.f32.xlu1 %v386_v50 }
 0x399   :  { %405 = vrot.lane.b32.xlu1 %v4875_v39, %s4737_s9 }
 0x39a   :  { %481 = vrot.lane.b32.xlu0 %v4879_v40, %s4737_s9 }
 0x39d   :  { %559 = vrot.lane.b32.xlu1 %v4875_v39, %s4738_s10 }
 0x3a1   :  { %637 = vrot.lane.b32.xlu1 %v4879_v40, %s4738_s10 }
 0x3a5   :  { %635 = vrot.lane.b32.xlu1 %v4879_v40, %s4739_s11 }
 0x411   :  { %v385_v51 = vpop.xlane.xlu0 %384 }
 0x412   :  { %v389_v52 = vsub.f32 %v381_v44, %v385_v51 }
 0x414   :  { %v391_v56 = vmul.f32 1.442695, %v389_v52 }
 0x415   :  { %v482_v53 = vpop.permute.xlu0 %481  ;;  %v388_v54 = vpop.xlane.xlu1 %387 }
 0x416   :  { %v390_v55 = vsub.f32 %v382_v48, %v388_v54  ;;  %4172 = vmatpush3.msra.mxu1 %v482_v53 }
 0x417   :  { %4181 = vmatprep.subr.mxu1 %v4734_v11 }
 0x418   :  { %v393_v57 = vmul.f32 1.442695, %v390_v55 }
 0x419   :  { %v406_v58 = vpop.permute.xlu1 %405 }
 0x41a   :  { %4629 = vpow2.f32 %v393_v57  ;;  %4167 = vmatpush3.msra.mxu0 %v406_v58 }
 0x41b   :  { %4176 = vmatprep.subr.mxu0 %v4734_v11  ;;  %4631 = vpow2.f32 %v391_v56 }
 0x41d   :  { %v560_v1 = vpop.permute.xlu1 %559 }
 0x421   :  { %v638_v3 = vpop.permute.xlu1 %637 }
 0x424   :  { %v4630_v59 = vpop.eup %4629 }
 0x425   :  { %v398_v60 = vsel %vm229_vm5, %v4630_v59, 0.0  ;;  %v4632_v61 = vpop.eup %4631  ;;  %v636_v7 = vpop.permute.xlu1 %635 }
 0x426   :  { %399 = vadd.xlane.f32.xlu0 %v398_v60  ;;  %v395_v62 = vsel %vm229_vm5, %v4632_v61, 0.0 }
 0x42a   :  { %396 = vadd.xlane.f32.xlu0 %v395_v62 }
 0x440   :  { %557 = vrot.lane.b32.xlu0 %v4875_v39, %s4739_s11 }
 0x4b3   :  { %v400_v63 = vpop.xlane.xlu0 %399 }
 0x4b4   :  { %4633 = vrcp.f32 %v400_v63 }
 0x4b7   :  { %v397_v0 = vpop.xlane.xlu0 %396 }
 0x4b8   :  { %4635 = vrcp.f32 %v397_v0 }
 0x4bb   :  { %v558_v8 = vpop.permute.xlu0 %557 }
 0x4be   :  { %v4634_v2 = vpop.eup %4633 }
 0x4bf   :  { %v404_v4 = vmul.f32 %v4634_v2, %v4630_v59 }
 0x4c1   :  { %4174 = vmatmul.mubr.msk.f32.vlgmr.msra.gmra.mrb[6].mxu1 %vm229_vm5, %v404_v4 }
 0x4c2   :  { %v4636_v5 = vpop.eup %4635  ;;  %4182 = vmatpush3.xpose.msk.msra.mxu1 %vm229_vm5, %v638_v3  ;;  %4183 = vmatprep.mubr.msk.f32.mxu1 %vm4735_vm4, %v4734_v11 }
 0x4c3   :  { %v403_v6 = vmul.f32 %v4636_v5, %v4632_v61  ;;  %4191 = vmatprep.subr.mxu1 %v4734_v11 }
 0x4c5   :  { %4169 = vmatmul.mubr.msk.f32.vlgmr.msra.gmra.mrb[2].mxu0 %vm229_vm5, %v403_v6  ;;  %4184 = vmatmul.mubr.msk.f32.vlgmr.msra.gmra.mrb[8].mxu1 %vm229_vm5, %v636_v7 }
 0x4c6   :  { %4177 = vmatpush3.xpose.msk.msra.mxu0 %vm229_vm5, %v560_v1  ;;  %4178 = vmatprep.mubr.msk.f32.mxu0 %vm4735_vm4, %v4734_v11 }
 0x4c7   :  { %4186 = vmatprep.subr.mxu0 %v4734_v11  ;;  %4193 = vmatprep.mubr.msk.f32.mxu1 %vm4735_vm4, %v4734_v11 }
 0x4c9   :  { %4179 = vmatmul.mubr.msk.f32.vlgmr.msra.gmra.mrb[4].mxu0 %vm229_vm5, %v558_v8 }
 0x4ca   :  { %4188 = vmatprep.mubr.msk.f32.mxu0 %vm4735_vm4, %v4734_v11 }
 0x594   :  { %v4929_v9 = vpop.f32.mrb[6].mxu1 }
 0x595   :  { %v4175_v10 = vpop.f32.mrb[7].mxu1 }
 0x598   :  { %v4931_v12 = vpop.f32.mrb[2].mxu0  ;;  %v709_v13 = vpop.f32.mrb[8].mxu1 }
 0x599   :  { %v714_v14 = vmul.f32 0.35355338, %v709_v13  ;;  %v4170_v15 = vpop.f32.mrb[3].mxu0  ;;  %v4185_v18 = vpop.f32.mrb[9].mxu1 }
 0x59b   :  { %v718_v19 = vsel %vm229_vm5, %v714_v14, -inf }
 0x59c   :  { %v631_v20 = vpop.f32.mrb[4].mxu0  ;;  %719 = vmax.xlane.f32.xlu1 %v718_v19 }
 0x59d   :  { %v713_v21 = vmul.f32 0.35355338, %v631_v20  ;;  %v4180_v22 = vpop.f32.mrb[5].mxu0 }
 0x59f   :  { %v715_v23 = vsel %vm229_vm5, %v713_v21, -inf }
 0x5a0   :  { %716 = vmax.xlane.f32.xlu0 %v715_v23 }
 0x5ad   :  { %737 = vrot.lane.b32.xlu1 %v4875_v39, %s4740_s12 }
 0x5b1   :  { %891 = vrot.lane.b32.xlu1 %v4875_v39, %s4741_s13 }
 0x5b5   :  { %969 = vrot.lane.b32.xlu1 %v4879_v40, %s4741_s13 }
 0x5b6   :  { %813 = vrot.lane.b32.xlu0 %v4879_v40, %s4740_s12 }
 0x5b9   :  { %967 = vrot.lane.b32.xlu1 %v4879_v40, %s4742_s14 }
 0x629   :  { %v720_v24 = vpop.xlane.xlu1 %719 }
 0x62a   :  { %v722_v27 = vsub.f32 %v714_v14, %v720_v24 }
 0x62c   :  { %v725_v28 = vmul.f32 1.442695, %v722_v27 }
 0x62d   :  { %v717_v29 = vpop.xlane.xlu0 %716  ;;  %v738_v30 = vpop.permute.xlu1 %737 }
 0x62e   :  { %4637 = vpow2.f32 %v725_v28  ;;  %v721_v35 = vsub.f32 %v713_v21, %v717_v29  ;;  %4187 = vmatpush3.msra.mxu0 %v738_v30 }
 0x62f   :  { %4196 = vmatprep.subr.mxu0 %v4734_v11 }
 0x630   :  { %v723_v36 = vmul.f32 1.442695, %v721_v35 }
 0x631   :  { %v814_v37 = vpop.permute.xlu0 %813  ;;  %v892_v46 = vpop.permute.xlu1 %891 }
 0x632   :  { %4639 = vpow2.f32 %v723_v36  ;;  %4192 = vmatpush3.msra.mxu1 %v814_v37 }
 0x633   :  { %4201 = vmatprep.subr.mxu1 %v4734_v11 }
 0x635   :  { %v970_v48 = vpop.permute.xlu1 %969 }
 0x638   :  { %v4638_v38 = vpop.eup %4637 }
 0x639   :  { %v730_v41 = vsel %vm229_vm5, %v4638_v38, 0.0  ;;  %v968_v52 = vpop.permute.xlu1 %967 }
 0x63a   :  { %731 = vadd.xlane.f32.xlu0 %v730_v41 }
 0x63c   :  { %v4640_v42 = vpop.eup %4639 }
 0x63d   :  { %v727_v43 = vsel %vm229_vm5, %v4640_v42, 0.0 }
 0x63e   :  { %728 = vadd.xlane.f32.xlu0 %v727_v43 }
 0x654   :  { %889 = vrot.lane.b32.xlu0 %v4875_v39, %s4742_s14 }
 0x6c7   :  { %v732_v44 = vpop.xlane.xlu0 %731 }
 0x6c8   :  { %4641 = vrcp.f32 %v732_v44 }
 0x6cb   :  { %v729_v45 = vpop.xlane.xlu0 %728 }
 0x6cc   :  { %4643 = vrcp.f32 %v729_v45 }
 0x6cf   :  { %v890_v53 = vpop.permute.xlu0 %889 }
 0x6d2   :  { %v4642_v47 = vpop.eup %4641 }
 0x6d3   :  { %v736_v49 = vmul.f32 %v4642_v47, %v4638_v38 }
 0x6d5   :  { %4194 = vmatmul.mubr.msk.f32.vlgmr.msra.gmra.mrb[10].mxu1 %vm229_vm5, %v736_v49  ;;  %v4609_v49 = vpack.i.bf16 %v4832_v17, %v4827_v16 }
 0x6d6   :  { %v4644_v50 = vpop.eup %4643  ;;  %4202 = vmatpush3.xpose.msk.msra.mxu1 %vm229_vm5, %v970_v48  ;;  %4203 = vmatprep.mubr.msk.f32.mxu1 %vm4735_vm4, %v4734_v11 }
 0x6d7   :  { %v735_v51 = vmul.f32 %v4644_v50, %v4640_v42  ;;  %4211 = vmatprep.subr.mxu1 %v4734_v11  ;;  %v4614_v50 = vpack.i.bf16 %v4846_v26, %v4841_v25 }
 0x6d9   :  { %4189 = vmatmul.mubr.msk.f32.vlgmr.msra.gmra.mrb[6].mxu0 %vm229_vm5, %v735_v51  ;;  %4204 = vmatmul.mubr.msk.f32.vlgmr.msra.gmra.mrb[12].mxu1 %vm229_vm5, %v968_v52 }
 0x6da   :  { %4197 = vmatpush3.xpose.msk.msra.mxu0 %vm229_vm5, %v892_v46  ;;  %4198 = vmatprep.mubr.msk.f32.mxu0 %vm4735_vm4, %v4734_v11 }
 0x6db   :  { %4206 = vmatprep.subr.mxu0 %v4734_v11  ;;  %4213 = vmatprep.mubr.msk.f32.mxu1 %vm4735_vm4, %v4734_v11 }
 0x6dd   :  { %4199 = vmatmul.mubr.msk.f32.vlgmr.msra.gmra.mrb[8].mxu0 %vm229_vm5, %v890_v53 }
 0x6de   :  { %4208 = vmatprep.mubr.msk.f32.mxu0 %vm4735_vm4, %v4734_v11 }
 0x7a8   :  { %v4967_v54 = vpop.f32.mrb[10].mxu1 }
 0x7a9   :  { %v4195_v55 = vpop.f32.mrb[11].mxu1 }
 0x7ac   :  { %v4969_v56 = vpop.f32.mrb[6].mxu0  ;;  %v1041_v57 = vpop.f32.mrb[12].mxu1 }
 0x7ad   :  { %v1046_v58 = vmul.f32 0.35355338, %v1041_v57  ;;  %v4190_v59 = vpop.f32.mrb[7].mxu0  ;;  %v4205_v60 = vpop.f32.mrb[13].mxu1 }
 0x7af   :  { %v1050_v61 = vsel %vm229_vm5, %v1046_v58, -inf }
 0x7b0   :  { %v963_v62 = vpop.f32.mrb[8].mxu0  ;;  %1051 = vmax.xlane.f32.xlu1 %v1050_v61 }
 0x7b1   :  { %v1045_v63 = vmul.f32 0.35355338, %v963_v62  ;;  %v4200_v0 = vpop.f32.mrb[9].mxu0 }
 0x7b3   :  { %v1047_v1 = vsel %vm229_vm5, %v1045_v63, -inf }
 0x7b4   :  { %1048 = vmax.xlane.f32.xlu0 %v1047_v1 }
 0x7c1   :  { %1069 = vrot.lane.b32.xlu1 %v4875_v39, %s4743_s15 }
 0x7c5   :  { %1223 = vrot.lane.b32.xlu1 %v4875_v39, %s4744_s16 }
 0x7c9   :  { %1301 = vrot.lane.b32.xlu1 %v4879_v40, %s4744_s16 }
 0x7ca   :  { %1145 = vrot.lane.b32.xlu0 %v4879_v40, %s4743_s15 }
 0x7cd   :  { %1299 = vrot.lane.b32.xlu1 %v4879_v40, %s4745_s0 }
 0x83d   :  { %v1052_v2 = vpop.xlane.xlu1 %1051 }
 0x83e   :  { %v1054_v3 = vsub.f32 %v1046_v58, %v1052_v2 }
 0x840   :  { %v1057_v4 = vmul.f32 1.442695, %v1054_v3 }
 0x841   :  { %v1049_v5 = vpop.xlane.xlu0 %1048  ;;  %v1070_v6 = vpop.permute.xlu1 %1069 }
 0x842   :  { %4645 = vpow2.f32 %v1057_v4  ;;  %v1053_v7 = vsub.f32 %v1045_v63, %v1049_v5  ;;  %4207 = vmatpush3.msra.mxu0 %v1070_v6 }
 0x843   :  { %4216 = vmatprep.subr.mxu0 %v4734_v11 }
 0x844   :  { %v1055_v8 = vmul.f32 1.442695, %v1053_v7 }
 0x845   :  { %v1146_v10 = vpop.permute.xlu0 %1145  ;;  %v1224_v21 = vpop.permute.xlu1 %1223 }
 0x846   :  { %4647 = vpow2.f32 %v1055_v8  ;;  %4212 = vmatpush3.msra.mxu1 %v1146_v10 }
 0x847   :  { %4221 = vmatprep.subr.mxu1 %v4734_v11 }
 0x849   :  { %v1302_v23 = vpop.permute.xlu1 %1301 }
 0x84c   :  { %v4646_v13 = vpop.eup %4645 }
 0x84d   :  { %v1062_v14 = vsel %vm229_vm5, %v4646_v13, 0.0  ;;  %v1300_v29 = vpop.permute.xlu1 %1299 }
 0x84e   :  { %1063 = vadd.xlane.f32.xlu0 %v1062_v14 }
 0x850   :  { %v4648_v15 = vpop.eup %4647 }
 0x851   :  { %v1059_v18 = vsel %vm229_vm5, %v4648_v15, 0.0 }
 0x852   :  { %1060 = vadd.xlane.f32.xlu0 %v1059_v18 }
 0x868   :  { %1221 = vrot.lane.b32.xlu0 %v4875_v39, %s4745_s0 }
 0x8db   :  { %v1064_v19 = vpop.xlane.xlu0 %1063 }
 0x8dc   :  { %4649 = vrcp.f32 %v1064_v19 }
 0x8df   :  { %v1061_v20 = vpop.xlane.xlu0 %1060 }
 0x8e0   :  { %4651 = vrcp.f32 %v1061_v20 }
 0x8e3   :  { %v1222_v30 = vpop.permute.xlu0 %1221 }
 0x8e6   :  { %v4650_v22 = vpop.eup %4649 }
 0x8e7   :  { %v1068_v24 = vmul.f32 %v4650_v22, %v4646_v13 }
 0x8e9   :  { %4214 = vmatmul.mubr.msk.f32.vlgmr.msra.gmra.mrb[14].mxu1 %vm229_vm5, %v1068_v24 }
 0x8ea   :  { %v4652_v27 = vpop.eup %4651  ;;  %4222 = vmatpush3.xpose.msk.msra.mxu1 %vm229_vm5, %v1302_v23  ;;  %4223 = vmatprep.mubr.msk.f32.mxu1 %vm4735_vm4, %v4734_v11 }
 0x8eb   :  { %v1067_v28 = vmul.f32 %v4652_v27, %v4648_v15  ;;  %4231 = vmatprep.subr.mxu1 %v4734_v11 }
 0x8ed   :  { %4209 = vmatmul.mubr.msk.f32.vlgmr.msra.gmra.mrb[10].mxu0 %vm229_vm5, %v1067_v28  ;;  %4224 = vmatmul.mubr.msk.f32.vlgmr.msra.gmra.mrb[16].mxu1 %vm229_vm5, %v1300_v29 }
 0x8ee   :  { %4217 = vmatpush3.xpose.msk.msra.mxu0 %vm229_vm5, %v1224_v21  ;;  %4218 = vmatprep.mubr.msk.f32.mxu0 %vm4735_vm4, %v4734_v11 }
 0x8ef   :  { %4226 = vmatprep.subr.mxu0 %v4734_v11  ;;  %4233 = vmatprep.mubr.msk.f32.mxu1 %vm4735_vm4, %v4734_v11 }
 0x8f1   :  { %4219 = vmatmul.mubr.msk.f32.vlgmr.msra.gmra.mrb[12].mxu0 %vm229_vm5, %v1222_v30 }
 0x8f2   :  { %4228 = vmatprep.mubr.msk.f32.mxu0 %vm4735_vm4, %v4734_v11 }
 0x9bc   :  { %v1217_v35 = vpop.f32.mrb[14].mxu1 }
 0x9bd   :  { %v4215_v36 = vpop.f32.mrb[15].mxu1 }
 0x9c0   :  { %v1141_v37 = vpop.f32.mrb[10].mxu0  ;;  %v1373_v38 = vpop.f32.mrb[16].mxu1 }
 0x9c1   :  { %v1378_v41 = vmul.f32 0.35355338, %v1373_v38  ;;  %v4210_v42 = vpop.f32.mrb[11].mxu0  ;;  %v4225_v43 = vpop.f32.mrb[17].mxu1 }
 0x9c3   :  { %v1382_v44 = vsel %vm229_vm5, %v1378_v41, -inf }
 0x9c4   :  { %v1295_v45 = vpop.f32.mrb[12].mxu0  ;;  %1383 = vmax.xlane.f32.xlu1 %v1382_v44 }
 0x9c5   :  { %v1377_v46 = vmul.f32 0.35355338, %v1295_v45  ;;  %v4220_v47 = vpop.f32.mrb[13].mxu0 }
 0x9c7   :  { %v1379_v48 = vsel %vm229_vm5, %v1377_v46, -inf }
 0x9c8   :  { %1380 = vmax.xlane.f32.xlu0 %v1379_v48 }
 0x9d5   :  { %1401 = vrot.lane.b32.xlu1 %v4875_v39, %s4746_s17 }
 0x9d9   :  { %4610 = vrot.lane.b32.xlu1 %v4609_v49, %s4747_s18 }
 0x9dd   :  { %4615 = vrot.lane.b32.xlu1 %v4614_v50, %s4747_s18 }
 0x9e1   :  { %1557 = vrot.lane.b32.xlu1 %v4967_v54, %s4748_s19 }
 0x9e5   :  { %1565 = vrot.lane.b32.xlu1 %v1217_v35, %s4749_s20 }
 0xa51   :  { %v1384_v51 = vpop.xlane.xlu1 %1383 }
 0xa52   :  { %v1386_v39 = vsub.f32 %v1378_v41, %v1384_v51 }
 0xa54   :  { %v1389_v52 = vmul.f32 1.442695, %v1386_v39  ;;  %v1727_v39 = vld [vmem:[%s5495_s3] sm:$0xff] }
 0xa55   :  { %v1381_v53 = vpop.xlane.xlu0 %1380  ;;  %v1402_v16 = vpop.permute.xlu1 %1401 }
 0xa56   :  { %4653 = vpow2.f32 %v1389_v52  ;;  %v1385_v17 = vsub.f32 %v1377_v46, %v1381_v53  ;;  %4227 = vmatpush3.msra.mxu0 %v1402_v16  ;;  %v1728_v52 = vld [vmem:[%s5495_s3 + $0x8] sm:$0xff]  ;;  %v1729_v16 = vld [vmem:[%s5495_s3 + $0x10] sm:$0xff] }
 0xa57   :  { %v4484_v53 = vpack.c.bf16 %v1728_v52, %v1727_v39 }
 0xa58   :  { %v1387_v55 = vmul.f32 1.442695, %v1385_v17  ;;  %v1730_v17 = vld [vmem:[%s5495_s3 + $0x18] sm:$0xff] }
 0xa59   :  { %v4611_v57 = vpop.permute.xlu1 %4610 }
 0xa5a   :  { %4655 = vpow2.f32 %v1387_v55  ;;  %v4613_v25 = vunpack.i.h.bf16 %v4611_v57  ;;  %v4612_v26 = vunpack.i.l.bf16 %v4611_v57  ;;  %v4488_v55 = vpack.c.bf16 %v1730_v17, %v1729_v16  ;;  %v1732_v57 = vld [vmem:[%s5496_s4] sm:$0xff] }
 0xa5c   :  { %v4476_v58 = vpack.c.bf16 %v4613_v25, %v4612_v26  ;;  %v1733_v25 = vld [vmem:[%s5496_s4 + $0x8] sm:$0xff]  ;;  %v1734_v26 = vld [vmem:[%s5496_s4 + $0x10] sm:$0xff] }
 0xa5d   :  { %v4616_v2 = vpop.permute.xlu1 %4615 }
 0xa5e   :  { %4477 = vmatprep.subr.bf16.mxu0 %v4476_v58  ;;  %v4618_v3 = vunpack.i.h.bf16 %v4616_v2  ;;  %v4617_v4 = vunpack.i.l.bf16 %v4616_v2  ;;  %v1740_v2 = vld [vmem:[%s5496_s4 + $0x40] sm:$0xff] }
 0xa60   :  { %v4654_v59 = vpop.eup %4653 }
 0xa61   :  { %v1394_v54 = vsel %vm229_vm5, %v4654_v59, 0.0  ;;  %v1558_v14 = vpop.permute.xlu1 %1557 }
 0xa62   :  { %1395 = vadd.xlane.f32.xlu0 %v1394_v54  ;;  %v1578_v22 = vsel %vm229_vm5, %v4929_v9, %v1558_v14 }
 0xa64   :  { %v4656_v60 = vpop.eup %4655 }
 0xa65   :  { %v1391_v61 = vsel %vm229_vm5, %v4656_v60, 0.0  ;;  %v1566_v18 = vpop.permute.xlu1 %1565 }
 0xa66   :  { %1392 = vadd.xlane.f32.xlu0 %v1391_v61  ;;  %v1581_v27 = vsel %vm1579_vm6, %v1578_v22, %v1566_v18  ;;  %v1737_v61 = vld [vmem:[%s5496_s4 + $0x28] sm:$0xff] }
 0xa7c   :  { %1477 = vrot.lane.b32.xlu0 %v4879_v40, %s4746_s17  ;;  %v4480_v40 = vpack.c.bf16 %v4618_v3, %v4617_v4  ;;  %v1741_v3 = vld [vmem:[%s5496_s4 + $0x48] sm:$0xff] }
 0xa7d   :  { %v4508_v4 = vpack.c.bf16 %v1741_v3, %v1740_v2  ;;  %v5162_v3 = vld [vmem:[%s5494_s2 + $0x38] sm:$0xff] }
 0xa80   :  { %1555 = vrot.lane.b32.xlu0 %v4969_v56, %s4748_s19 }
 0xa84   :  { %1563 = vrot.lane.b32.xlu0 %v1141_v37, %s4749_s20 }
 0xaef   :  { %v1396_v62 = vpop.xlane.xlu0 %1395 }
 0xaf0   :  { %4657 = vrcp.f32 %v1396_v62 }
 0xaf3   :  { %v1393_v63 = vpop.xlane.xlu0 %1392 }
 0xaf4   :  { %4659 = vrcp.f32 %v1393_v63  ;;  %v1738_v63 = vld [vmem:[%s5496_s4 + $0x30] sm:$0xff] }
 0xaf7   :  { %v1478_v0 = vpop.permute.xlu0 %1477 }
 0xaf8   :  { %4232 = vmatpush3.msra.mxu1 %v1478_v0  ;;  %v1739_v0 = vld [vmem:[%s5496_s4 + $0x38] sm:$0xff] }
 0xaf9   :  { %4485 = vmatprep.subr.bf16.mxu1 %v4484_v53 }
 0xafa   :  { %v4658_v1 = vpop.eup %4657 }
 0xafb   :  { %v1400_v5 = vmul.f32 %v4658_v1, %v4654_v59  ;;  %v1556_v15 = vpop.permute.xlu0 %1555  ;;  %v1735_v59 = vld [vmem:[%s5496_s4 + $0x18] sm:$0xff]  ;;  %v4504_v1 = vpack.c.bf16 %v1739_v0, %v1738_v63  ;;  %v5150_v0 = vld [vmem:[%s5494_s2 + $0x28] sm:$0xff] }
 0xafc   :  { %v1577_v20 = vsel %vm229_vm5, %v4931_v12, %v1556_v15  ;;  %v5042_v12 = vld [vmem:[%s5497_s5] sm:$0xff]  ;;  %v4496_v54 = vpack.c.bf16 %v1735_v59, %v1734_v26 }
 0xafd   :  { %4234 = vmatmul.mubr.msk.f32.vlgmr.msra.gmra.mrb[18].mxu1 %vm229_vm5, %v1400_v5  ;;  %v1588_v9 = vrot.slane %v5042_v12, %v4869_v34  ;;  %v1742_v5 = vld [vmem:[%s5496_s4 + $0x50] sm:$0xff] }
 0xafe   :  { %v4660_v6 = vpop.eup %4659  ;;  %4487 = vmatpush3.bf16.msra.mxu1 %v4484_v53 }
 0xaff   :  { %v1399_v7 = vmul.f32 %v4660_v6, %v4656_v60  ;;  %v1564_v19 = vpop.permute.xlu0 %1563  ;;  %4489 = vmatprep.subr.bf16.mxu1 %v4488_v55  ;;  %v1736_v60 = vld [vmem:[%s5496_s4 + $0x20] sm:$0xff]  ;;  %v1743_v6 = vld [vmem:[%s5496_s4 + $0x58] sm:$0xff] }
 0xb00   :  { %v1580_v23 = vsel %vm1579_vm6, %v1577_v20, %v1564_v19  ;;  %v4500_v62 = vpack.c.bf16 %v1737_v61, %v1736_v60  ;;  %v1717_v20 = vsub.s32 1, %v4862_v33 }
 0xb01   :  { %4229 = vmatmul.mubr.msk.f32.vlgmr.msra.gmra.mrb[14].mxu0 %vm229_vm5, %v1399_v7  ;;  %v1744_v7 = vld [vmem:[%s5496_s4 + $0x60] sm:$0xff] }
 0xb02   :  { %4479 = vmatpush3.bf16.msra.mxu0 %v4476_v58  ;;  %4491 = vmatpush3.bf16.msra.mxu1 %v4488_v55  ;;  %v4492_v58 = vpack.c.bf16 %v1733_v25, %v1732_v57  ;;  %v1718_v22 = vrot.slane %v5042_v12, %v1717_v20 }
 0xb03   :  { %4481 = vmatprep.subr.bf16.mxu0 %v4480_v40 }
 0xb06   :  { %4483 = vmatpush3.bf16.msra.mxu0 %v4480_v40  ;;  %v4512_v40 = vpack.c.bf16 %v1743_v6, %v1742_v5 }
 0xb07   :  { %4493 = vmatprep.subr.bf16.mxu0 %v4492_v58 }
 0xbd0   :  { %v1549_v56 = vpop.f32.mrb[18].mxu1 }
 0xbd1   :  { %1573 = vrot.lane.b32.xlu1 %v1549_v56, %s4750_s21  ;;  %v4235_v8 = vpop.f32.mrb[19].mxu1  ;;  %v1745_v56 = vld [vmem:[%s5496_s4 + $0x68] sm:$0xff] }
 0xbd2   :  { %v4516_v8 = vpack.c.bf16 %v1745_v56, %v1744_v7 }
 0xbd4   :  { %v1473_v10 = vpop.f32.mrb[14].mxu0 }
 0xbd5   :  { %1571 = vrot.lane.b32.xlu0 %v1473_v10, %s4750_s21  ;;  %v4230_v13 = vpop.f32.mrb[15].mxu0 }
 0xc43   :  { %v1574_v21 = vpop.permute.xlu1 %1573 }
 0xc44   :  { %v1584_v29 = vsel %vm1582_vm7, %v1581_v27, %v1574_v21  ;;  %v1723_v21 = vsub.s32 2, %v4862_v33 }
 0xc46   :  { %v1724_v27 = vrot.slane %v5042_v12, %v1723_v21 }
 0xc47   :  { %v1572_v24 = vpop.permute.xlu0 %1571 }
 0xc48   :  { %v1583_v28 = vsel %vm1582_vm7, %v1580_v23, %v1572_v24 }
 0xc49   :  { %4244 = vmatprep.mubr.msk.f32.mxu0 %vm144_vm3, %v1583_v28 }
 0xc4a   :  { %4245 = vmatmul.mubr.msk.f32.vlgmr.msra.gmra.mrb[16].mxu0 %vm144_vm3, %v1584_v29 }
 0xc4b   :  { %4495 = vmatpush3.bf16.msra.mxu0 %v4492_v58 }
 0xc4c   :  { %4497 = vmatprep.subr.bf16.mxu0 %v4496_v54 }
 0xc4f   :  { %4499 = vmatpush3.bf16.msra.mxu0 %v4496_v54 }
 0xc50   :  { %4501 = vmatprep.subr.bf16.mxu0 %v4500_v62 }
 0xc53   :  { %4503 = vmatpush3.bf16.msra.mxu0 %v4500_v62 }
 0xc54   :  { %4505 = vmatprep.subr.bf16.mxu0 %v4504_v1 }
 0xc57   :  { %4507 = vmatpush3.bf16.msra.mxu0 %v4504_v1  ;;  %v5155_v1 = vld [vmem:[%s5494_s2 + $0x30] sm:$0xff] }
 0xc58   :  { %4509 = vmatprep.subr.bf16.mxu0 %v4508_v4  ;;  %v4524_v2 = vpack.c.bf16 %v5155_v1, %v5150_v0 }
 0xc5a   :  { %4525 = vmatprep.subr.bf16.mxu1 %v4524_v2 }
 0xc5b   :  { %4511 = vmatpush3.bf16.msra.mxu0 %v4508_v4  ;;  %v5167_v4 = vld [vmem:[%s5494_s2 + $0x40] sm:$0xff] }
 0xc5c   :  { %4513 = vmatprep.subr.bf16.mxu0 %v4512_v40  ;;  %v4528_v5 = vpack.c.bf16 %v5167_v4, %v5162_v3 }
 0xc5f   :  { %4515 = vmatpush3.bf16.msra.mxu0 %v4512_v40 }
 0xc60   :  { %4517 = vmatprep.subr.bf16.mxu0 %v4516_v8 }
 0xc63   :  { %4519 = vmatpush3.bf16.msra.mxu0 %v4516_v8 }
 0xd1d   :  { %v4246_v30 = vpop.f32.mrb[16].mxu0 }
 0xd1e   :  { %v1683_v35 = vadd.f32 %v4246_v30, %v1588_v9  ;;  %v1677_v36 = vpop.f32.mrb[17].mxu0 }
 0xd1f   :  { %v1678_v37 = vadd.f32 %v1677_v36, %v1588_v9 }
 0xd20   :  { %v1687_v38 = vadd.f32 %v1683_v35, %v4856_v32 }
 0xd21   :  { %v1686_v41 = vadd.f32 %v1678_v37, %v4854_v31  ;;  %v1746_v37 = vld [vmem:[%s5496_s4 + $0x70] sm:$0xff] }
 0xd22   :  { %v1691_v42 = vsel %vm144_vm3, %v1687_v38, 0.0 }
 0xd23   :  { %1692 = vadd.xlane.f32.xlu1 %v1691_v42  ;;  %v1688_v43 = vsel %vm144_vm3, %v1686_v41, 0.0  ;;  %v1731_v42 = vld [vmem:[%s5495_s3 + $0x20] sm:$0xff] }
 0xd24   :  { %1689 = vadd.xlane.f32.xlu0 %v1688_v43  ;;  %v1751_v43 = vrot.slane %v1731_v42, %v4869_v34 }
 0xdb0   :  { %v1693_v44 = vpop.xlane.xlu1 %1692 }
 0xdb1   :  { %v1696_v45 = vmul.f32 0.03125, %v1693_v44  ;;  %v1690_v46 = vpop.xlane.xlu0 %1689 }
 0xdb2   :  { %v1695_v47 = vmul.f32 0.03125, %v1690_v46 }
 0xdb3   :  { %v5050_v48 = vsub.f32 %v1687_v38, %v1696_v45  ;;  %v1747_v38 = vld [vmem:[%s5496_s4 + $0x78] sm:$0xff] }
 0xdb4   :  { %v5052_v49 = vsub.f32 %v1686_v41, %v1695_v47  ;;  %v4520_v41 = vpack.c.bf16 %v1747_v38, %v1746_v37 }
 0xdb5   :  { %v1700_v31 = vmul.f32 %v5050_v48, %v5050_v48 }
 0xdb6   :  { %v1699_v50 = vmul.f32 %v5052_v49, %v5052_v49  ;;  %4521 = vmatprep.subr.bf16.mxu0 %v4520_v41 }
 0xdb7   :  { %v1704_v51 = vsel %vm144_vm3, %v1700_v31, 0.0  ;;  %4523 = vmatpush3.bf16.msra.mxu0 %v4520_v41 }
 0xdb8   :  { %v1701_v32 = vsel %vm144_vm3, %v1699_v50, 0.0  ;;  %4334 = vmatprep.subr.mxu0 %v4734_v11  ;;  %v1837_v50 = vsub.s32 3, %v4862_v33 }
 0xdb9   :  { %1702 = vadd.xlane.f32.xlu0 %v1701_v32 }
 0xdba   :  { %v1838_v32 = vrot.slane %v5042_v12, %v1837_v50 }
 0xdbd   :  { %1705 = vadd.xlane.f32.xlu0 %v1704_v51 }
 0xe46   :  { %v1703_v10 = vpop.xlane.xlu0 %1702 }
 0xe47   :  { %v1707_v13 = vmul.f32 0.03125, %v1703_v10 }
 0xe49   :  { %v1709_v14 = vadd.f32 1e-05, %v1707_v13  ;;  %v1944_v13 = vsub.s32 4, %v4862_v33 }
 0xe4a   :  { %v1706_v15 = vpop.xlane.xlu0 %1705 }
 0xe4b   :  { %4661 = vrsqrt.f32 %v1709_v14  ;;  %v1708_v18 = vmul.f32 0.03125, %v1706_v15  ;;  %v1950_v14 = vsub.s32 5, %v4862_v33  ;;  %v1945_v15 = vrot.slane %v5042_v12, %v1944_v13 }
 0xe4d   :  { %v1710_v19 = vadd.f32 1e-05, %v1708_v18 }
 0xe4f   :  { %4663 = vrsqrt.f32 %v1710_v19 }
 0xe55   :  { %v4662_v23 = vpop.eup %4661 }
 0xe56   :  { %v1713_v24 = vmul.f32 %v4662_v23, %v5052_v49 }
 0xe58   :  { %v1719_v28 = vmul.f32 %v1718_v22, %v1713_v24  ;;  %v1951_v24 = vrot.slane %v5042_v12, %v1950_v14 }
 0xe59   :  { %v4664_v29 = vpop.eup %4663 }
 0xe5a   :  { %v1714_v9 = vmul.f32 %v4664_v29, %v5050_v48  ;;  %v1725_v30 = vadd.f32 %v1724_v27, %v1719_v28 }
 0xe5c   :  { %v1720_v35 = vmul.f32 %v1718_v22, %v1714_v9  ;;  %4255 = vmatprep.mubr.msk.f32.mxu1 %vm144_vm3, %v1725_v30 }
 0xe5e   :  { %v1726_v36 = vadd.f32 %v1724_v27, %v1720_v35 }
 0xe60   :  { %4256 = vmatmul.mubr.msk.f32.vlgmr.msra.gmra.mrb[20].mxu1 %vm144_vm3, %v1726_v36 }
 0xe61   :  { %4527 = vmatpush3.bf16.msra.mxu1 %v4524_v2 }
 0xe62   :  { %4529 = vmatprep.subr.bf16.mxu1 %v4528_v5 }
 0xe65   :  { %4531 = vmatpush3.bf16.msra.mxu1 %v4528_v5 }
 0xe66   :  { %4304 = vmatprep.subr.mxu1 %v4734_v11 }
 0xf33   :  { %v4257_v44 = vpop.f32.mrb[20].mxu1 }
 0xf34   :  { %v1830_v45 = vadd.f32 %v4257_v44, %v1751_v43  ;;  %v1824_v46 = vpop.f32.mrb[21].mxu1 }
 0xf35   :  { %v1825_v47 = vadd.f32 %v1824_v46, %v1751_v43 }
 0xf36   :  { %v1834_v49 = vmax.f32 %v1830_v45, 0.0 }
 0xf37   :  { %v1833_v48 = vmax.f32 %v1825_v47, 0.0 }
 0xf39   :  { %4290 = vmatprep.mubr.f32.mxu0 %v1833_v48 }
 0xf3a   :  { %4291 = vmatmul.mubr.f32.vlgmr.msra.gmra.mrb[18].mxu0 %v1834_v49 }
 0xf3b   :  { %4336 = vmatprep.mubr.msk.f32.mxu0 %vm4735_vm4, %v4734_v11 }
0x100d   :  { %v4292_v31 = vpop.f32.mrb[18].mxu0 }
0x100e   :  { %v1911_v51 = vadd.f32 %v4292_v31, %v1838_v32  ;;  %v1905_v39 = vpop.f32.mrb[19].mxu0 }
0x100f   :  { %v1906_v52 = vadd.f32 %v1905_v39, %v1838_v32 }
0x1010   :  { %v1915_v53 = vadd.f32 %v1911_v51, %v1726_v36 }
0x1011   :  { %v1914_v16 = vadd.f32 %v1906_v52, %v1725_v30  ;;  %v3919_v30 = vld [vmem:[%s5494_s2 + $0x48] sm:$0xff]  ;;  %s4751_s2 = smov [#allocation2]  }
0x1012   :  { %v1919_v17 = vsel %vm144_vm3, %v1915_v53, 0.0  ;;  %v1965_v12 = vrot.slane %v3919_v30, %v4869_v34 }
0x1013   :  { %1920 = vadd.xlane.f32.xlu0 %v1919_v17  ;;  %v1916_v55 = vsel %vm144_vm3, %v1914_v16, 0.0 }
0x1014   :  { %1917 = vadd.xlane.f32.xlu1 %v1916_v55 }
0x10a0   :  { %v1921_v57 = vpop.xlane.xlu0 %1920 }
0x10a1   :  { %v1923_v25 = vmul.f32 0.03125, %v1921_v57  ;;  %v1918_v26 = vpop.xlane.xlu1 %1917 }
0x10a2   :  { %v1922_v58 = vmul.f32 0.03125, %v1918_v26 }
0x10a3   :  { %v1925_v59 = vsub.f32 %v1915_v53, %v1923_v25 }
0x10a4   :  { %v1924_v54 = vsub.f32 %v1914_v16, %v1922_v58 }
0x10a5   :  { %v1927_v60 = vmul.f32 %v1925_v59, %v1925_v59 }
0x10a6   :  { %v1926_v61 = vmul.f32 %v1924_v54, %v1924_v54 }
0x10a7   :  { %v1931_v62 = vsel %vm144_vm3, %v1927_v60, 0.0 }
0x10a8   :  { %1932 = vadd.xlane.f32.xlu0 %v1931_v62  ;;  %v1928_v63 = vsel %vm144_vm3, %v1926_v61, 0.0 }
0x10a9   :  { %1929 = vadd.xlane.f32.xlu1 %v1928_v63 }
0x1135   :  { %v1933_v6 = vpop.xlane.xlu0 %1932 }
0x1136   :  { %v1935_v40 = vmul.f32 0.03125, %v1933_v6  ;;  %v1930_v7 = vpop.xlane.xlu1 %1929 }
0x1137   :  { %v1934_v56 = vmul.f32 0.03125, %v1930_v7 }
0x1138   :  { %v1937_v8 = vadd.f32 1e-05, %v1935_v40 }
0x1139   :  { %v1936_v10 = vadd.f32 1e-05, %v1934_v56 }
0x113a   :  { %4665 = vrsqrt.f32 %v1937_v8 }
0x113b   :  { %4667 = vrsqrt.f32 %v1936_v10 }
0x1144   :  { %v4666_v18 = vpop.eup %4665 }
0x1145   :  { %v4668_v19 = vpop.eup %4667  ;;  %v1941_v22 = vmul.f32 %v4666_v18, %v1925_v59 }
0x1146   :  { %v1940_v23 = vmul.f32 %v4668_v19, %v1924_v54 }
0x1147   :  { %v1947_v27 = vmul.f32 %v1945_v15, %v1941_v22 }
0x1148   :  { %v1946_v28 = vmul.f32 %v1945_v15, %v1940_v23 }
0x1149   :  { %v5182_v9 = vadd.f32 %v1951_v24, %v1947_v27 }
0x114a   :  { %v5180_v29 = vadd.f32 %v1951_v24, %v1946_v28 }
0x114c   :  { %4301 = vmatprep.mubr.msk.f32.mxu1 %vm144_vm3, %v5180_v29 }
0x114d   :  { %4302 = vmatmul.mubr.msk.f32.vlgmr.msra.gmra.mrb[22].mxu1 %vm144_vm3, %v5182_v9 }
0x114e   :  { %4306 = vmatprep.mubr.msk.f32.mxu1 %vm4735_vm4, %v4734_v11 }
0x1220   :  { %v4303_v35 = vpop.f32.mrb[22].mxu1 }
0x1221   :  { %v5194_v36 = vadd.f32 %v4303_v35, %v1965_v12  ;;  %v2038_v37 = vpop.f32.mrb[23].mxu1 }
0x1222   :  { %v5196_v38 = vadd.f32 %v2038_v37, %v1965_v12 }
0x1223   :  { %2125 = vrot.lane.b32.xlu0 %v5194_v36, %s4736_s8 }
0x1224   :  { %2048 = vrot.lane.b32.xlu1 %v5196_v38, %s4736_s8  ;;  %s3870_s8 = sshll.u32 %s4751_s2, 4  ;;  %s3871_s8 = int_to_ptr.vmem [resolvable:$true] %s3870_s8 }
0x1225   :  { %p4714_p1 = scmp.lt.s32.totalorder %s3871_s8, %s3871_s8 }
0x1295   :  { %v2126_v42 = vpop.permute.xlu0 %2125 }
0x1296   :  { %v2049_v41 = vpop.permute.xlu1 %2048 }
0x1297   :  { %4305 = vmatpush3.xpose.msk.msra.mxu1 %vm229_vm5, %v2049_v41 }
0x1298   :  { %4309 = vmatprep.subr.mxu1 %v4734_v11 }
0x129a   :  { %4307 = vmatmul.mubr.msk.f32.vlgmr.msra.gmra.mrb[24].mxu1 %vm229_vm5, %v5196_v38 }
0x129b   :  { %4310 = vmatpush3.xpose.msk.msra.mxu1 %vm229_vm5, %v2126_v42  ;;  %4311 = vmatprep.mubr.msk.f32.mxu1 %vm4735_vm4, %v4734_v11 }
0x129c   :  { %4314 = vmatprep.subr.mxu1 %v4734_v11 }
0x129e   :  { %4312 = vmatmul.mubr.msk.f32.vlgmr.msra.gmra.mrb[26].mxu1 %vm229_vm5, %v5194_v36 }
0x129f   :  { %4316 = vmatprep.mubr.msk.f32.mxu1 %vm4735_vm4, %v4734_v11 }
0x136d   :  { %v2120_v43 = vpop.f32.mrb[24].mxu1 }
0x136e   :  { %v2201_v44 = vmul.f32 0.35355338, %v2120_v43  ;;  %v4308_v45 = vpop.f32.mrb[25].mxu1 }
0x1370   :  { %v2203_v46 = vsel %vm229_vm5, %v2201_v44, -inf }
0x1371   :  { %2204 = vmax.xlane.f32.xlu1 %v2203_v46  ;;  %v2197_v47 = vpop.f32.mrb[26].mxu1 }
0x1372   :  { %v2202_v48 = vmul.f32 0.35355338, %v2197_v47  ;;  %v4313_v49 = vpop.f32.mrb[27].mxu1 }
0x1374   :  { %v2206_v32 = vsel %vm229_vm5, %v2202_v48, -inf }
0x1375   :  { %2207 = vmax.xlane.f32.xlu0 %v2206_v32 }
0x1382   :  { %2225 = vrot.lane.b32.xlu1 %v5196_v38, %s4737_s9 }
0x13fe   :  { %v2205_v31 = vpop.xlane.xlu1 %2204 }
0x13ff   :  { %v2209_v51 = vsub.f32 %v2201_v44, %v2205_v31 }
0x1401   :  { %v2211_v39 = vmul.f32 1.442695, %v2209_v51 }
0x1402   :  { %v2226_v52 = vpop.permute.xlu1 %2225  ;;  %v2208_v53 = vpop.xlane.xlu0 %2207 }
0x1403   :  { %4669 = vpow2.f32 %v2211_v39  ;;  %v2210_v16 = vsub.f32 %v2202_v48, %v2208_v53  ;;  %4315 = vmatpush3.msra.mxu1 %v2226_v52 }
0x1404   :  { %4319 = vmatprep.subr.mxu1 %v4734_v11 }
0x1405   :  { %v2213_v17 = vmul.f32 1.442695, %v2210_v16 }
0x1407   :  { %4671 = vpow2.f32 %v2213_v17 }
0x140d   :  { %v4670_v55 = vpop.eup %4669 }
0x140e   :  { %v2215_v57 = vsel %vm229_vm5, %v4670_v55, 0.0 }
0x140f   :  { %2216 = vadd.xlane.f32.xlu1 %v2215_v57 }
0x1411   :  { %v4672_v25 = vpop.eup %4671 }
0x1412   :  { %v2218_v26 = vsel %vm229_vm5, %v4672_v25, 0.0 }
0x1413   :  { %2219 = vadd.xlane.f32.xlu0 %v2218_v26 }
0x1420   :  { %2379 = vrot.lane.b32.xlu1 %v5196_v38, %s4738_s10 }
0x1424   :  { %2377 = vrot.lane.b32.xlu1 %v5196_v38, %s4739_s11 }
0x1428   :  { %2455 = vrot.lane.b32.xlu1 %v5194_v36, %s4739_s11 }
0x1429   :  { %2301 = vrot.lane.b32.xlu0 %v5194_v36, %s4737_s9 }
0x142d   :  { %2457 = vrot.lane.b32.xlu0 %v5194_v36, %s4738_s10 }
0x149c   :  { %v2217_v58 = vpop.xlane.xlu1 %2216 }
0x149d   :  { %4673 = vrcp.f32 %v2217_v58 }
0x14a0   :  { %v2220_v59 = vpop.xlane.xlu0 %2219  ;;  %v2380_v63 = vpop.permute.xlu1 %2379 }
0x14a1   :  { %4675 = vrcp.f32 %v2220_v59 }
0x14a4   :  { %v2302_v61 = vpop.permute.xlu0 %2301  ;;  %v2378_v5 = vpop.permute.xlu1 %2377 }
0x14a7   :  { %v4674_v54 = vpop.eup %4673 }
0x14a8   :  { %v2223_v60 = vmul.f32 %v4674_v54, %v4670_v55  ;;  %v2458_v6 = vpop.permute.xlu0 %2457  ;;  %v2456_v40 = vpop.permute.xlu1 %2455 }
0x14aa   :  { %4317 = vmatmul.mubr.msk.f32.vlgmr.msra.gmra.mrb[28].mxu1 %vm229_vm5, %v2223_v60 }
0x14ab   :  { %v4676_v62 = vpop.eup %4675  ;;  %4320 = vmatpush3.msra.mxu1 %v2302_v61  ;;  %4321 = vmatprep.mubr.msk.f32.mxu1 %vm4735_vm4, %v4734_v11 }
0x14ac   :  { %v2224_v2 = vmul.f32 %v4676_v62, %v4672_v25  ;;  %4324 = vmatprep.subr.mxu1 %v4734_v11 }
0x14ae   :  { %4322 = vmatmul.mubr.msk.f32.vlgmr.msra.gmra.mrb[30].mxu1 %vm229_vm5, %v2224_v2 }
0x14af   :  { %4326 = vmatprep.mubr.msk.f32.mxu1 %vm4735_vm4, %v4734_v11 }
0x14b2   :  { %4325 = vmatpush3.xpose.msk.msra.mxu1 %vm229_vm5, %v2380_v63 }
0x14b3   :  { %4329 = vmatprep.subr.mxu1 %v4734_v11 }
0x14b5   :  { %4327 = vmatmul.mubr.msk.f32.vlgmr.msra.gmra.mrb[32].mxu1 %vm229_vm5, %v2378_v5 }
0x14b6   :  { %4330 = vmatpush3.xpose.msk.msra.mxu1 %vm229_vm5, %v2458_v6  ;;  %4331 = vmatprep.mubr.msk.f32.mxu1 %vm4735_vm4, %v4734_v11 }
0x14b7   :  { %4339 = vmatprep.subr.mxu1 %v4734_v11 }
0x14b9   :  { %4332 = vmatmul.mubr.msk.f32.vlgmr.msra.gmra.mrb[34].mxu1 %vm229_vm5, %v2456_v40 }
0x14ba   :  { %4341 = vmatprep.mubr.msk.f32.mxu1 %vm4735_vm4, %v4734_v11 }
0x157d   :  { %v5248_v7 = vpop.f32.mrb[28].mxu1 }
0x157e   :  { %v4318_v56 = vpop.f32.mrb[29].mxu1 }
0x1581   :  { %v5250_v8 = vpop.f32.mrb[30].mxu1 }
0x1582   :  { %v4323_v10 = vpop.f32.mrb[31].mxu1 }
0x1588   :  { %v2451_v15 = vpop.f32.mrb[32].mxu1 }
0x1589   :  { %v2533_v18 = vmul.f32 0.35355338, %v2451_v15  ;;  %v4328_v19 = vpop.f32.mrb[33].mxu1 }
0x158b   :  { %v2535_v22 = vsel %vm229_vm5, %v2533_v18, -inf }
0x158c   :  { %2536 = vmax.xlane.f32.xlu0 %v2535_v22  ;;  %v2529_v23 = vpop.f32.mrb[34].mxu1 }
0x158d   :  { %v2534_v24 = vmul.f32 0.35355338, %v2529_v23  ;;  %v4333_v27 = vpop.f32.mrb[35].mxu1 }
0x158f   :  { %v2538_v28 = vsel %vm229_vm5, %v2534_v24, -inf }
0x1590   :  { %2539 = vmax.xlane.f32.xlu1 %v2538_v28 }
0x15a1   :  { %2557 = vrot.lane.b32.xlu1 %v5196_v38, %s4740_s12 }
0x15a2   :  { %2633 = vrot.lane.b32.xlu0 %v5194_v36, %s4740_s12 }
0x15a5   :  { %2711 = vrot.lane.b32.xlu1 %v5196_v38, %s4741_s13 }
0x15a9   :  { %2789 = vrot.lane.b32.xlu1 %v5194_v36, %s4741_s13 }
0x15ad   :  { %2787 = vrot.lane.b32.xlu1 %v5194_v36, %s4742_s14 }
0x1619   :  { %v2537_v30 = vpop.xlane.xlu0 %2536 }
0x161a   :  { %v2541_v12 = vsub.f32 %v2533_v18, %v2537_v30 }
0x161c   :  { %v2543_v35 = vmul.f32 1.442695, %v2541_v12 }
0x161d   :  { %v2634_v37 = vpop.permute.xlu0 %2633  ;;  %v2540_v41 = vpop.xlane.xlu1 %2539 }
0x161e   :  { %4677 = vpow2.f32 %v2543_v35  ;;  %v2542_v42 = vsub.f32 %v2534_v24, %v2540_v41  ;;  %4340 = vmatpush3.msra.mxu1 %v2634_v37 }
0x161f   :  { %4349 = vmatprep.subr.mxu1 %v4734_v11 }
0x1620   :  { %v2545_v43 = vmul.f32 1.442695, %v2542_v42 }
0x1621   :  { %v2558_v44 = vpop.permute.xlu1 %2557 }
0x1622   :  { %4679 = vpow2.f32 %v2545_v43  ;;  %4335 = vmatpush3.msra.mxu0 %v2558_v44 }
0x1623   :  { %4344 = vmatprep.subr.mxu0 %v4734_v11 }
0x1625   :  { %v2712_v31 = vpop.permute.xlu1 %2711 }
0x1628   :  { %v4678_v45 = vpop.eup %4677 }
0x1629   :  { %v2547_v46 = vsel %vm229_vm5, %v4678_v45, 0.0  ;;  %v2790_v53 = vpop.permute.xlu1 %2789 }
0x162a   :  { %2548 = vadd.xlane.f32.xlu0 %v2547_v46 }
0x162c   :  { %v4680_v47 = vpop.eup %4679 }
0x162d   :  { %v2550_v48 = vsel %vm229_vm5, %v4680_v47, 0.0  ;;  %v2788_v55 = vpop.permute.xlu1 %2787 }
0x162e   :  { %2551 = vadd.xlane.f32.xlu0 %v2550_v48 }
0x1644   :  { %2709 = vrot.lane.b32.xlu0 %v5196_v38, %s4742_s14 }
0x16b7   :  { %v2549_v49 = vpop.xlane.xlu0 %2548 }
0x16b8   :  { %4681 = vrcp.f32 %v2549_v49 }
0x16bb   :  { %v2552_v32 = vpop.xlane.xlu0 %2551 }
0x16bc   :  { %4683 = vrcp.f32 %v2552_v32 }
0x16bf   :  { %v2710_v17 = vpop.permute.xlu0 %2709 }
0x16c2   :  { %v4682_v51 = vpop.eup %4681 }
0x16c3   :  { %v2555_v39 = vmul.f32 %v4682_v51, %v4678_v45 }
0x16c5   :  { %4337 = vmatmul.mubr.msk.f32.vlgmr.msra.gmra.mrb[20].mxu0 %vm229_vm5, %v2555_v39 }
0x16c6   :  { %v4684_v52 = vpop.eup %4683  ;;  %4345 = vmatpush3.xpose.msk.msra.mxu0 %vm229_vm5, %v2712_v31  ;;  %4346 = vmatprep.mubr.msk.f32.mxu0 %vm4735_vm4, %v4734_v11 }
0x16c7   :  { %v2556_v16 = vmul.f32 %v4684_v52, %v4680_v47  ;;  %4354 = vmatprep.subr.mxu0 %v4734_v11 }
0x16c9   :  { %4342 = vmatmul.mubr.msk.f32.vlgmr.msra.gmra.mrb[36].mxu1 %vm229_vm5, %v2556_v16  ;;  %4347 = vmatmul.mubr.msk.f32.vlgmr.msra.gmra.mrb[22].mxu0 %vm229_vm5, %v2710_v17 }
0x16ca   :  { %4350 = vmatpush3.xpose.msk.msra.mxu1 %vm229_vm5, %v2790_v53  ;;  %4351 = vmatprep.mubr.msk.f32.mxu1 %vm4735_vm4, %v4734_v11 }
0x16cb   :  { %4359 = vmatprep.subr.mxu1 %v4734_v11  ;;  %4356 = vmatprep.mubr.msk.f32.mxu0 %vm4735_vm4, %v4734_v11 }
0x16cd   :  { %4352 = vmatmul.mubr.msk.f32.vlgmr.msra.gmra.mrb[38].mxu1 %vm229_vm5, %v2788_v55 }
0x16ce   :  { %4361 = vmatprep.mubr.msk.f32.mxu1 %vm4735_vm4, %v4734_v11 }
0x1798   :  { %v5286_v57 = vpop.f32.mrb[20].mxu0 }
0x1799   :  { %v4338_v25 = vpop.f32.mrb[21].mxu0 }
0x179a   :  { %v4624_v25 = vpack.i.bf16 %v5167_v4, %v5162_v3 }
0x179c   :  { %v5288_v26 = vpop.f32.mrb[36].mxu1  ;;  %v2783_v58 = vpop.f32.mrb[22].mxu0 }
0x179d   :  { %v2865_v59 = vmul.f32 0.35355338, %v2783_v58  ;;  %v4343_v54 = vpop.f32.mrb[37].mxu1  ;;  %v4348_v60 = vpop.f32.mrb[23].mxu0 }
0x179f   :  { %v2867_v61 = vsel %vm229_vm5, %v2865_v59, -inf }
0x17a0   :  { %2868 = vmax.xlane.f32.xlu0 %v2867_v61  ;;  %v2861_v62 = vpop.f32.mrb[38].mxu1 }
0x17a1   :  { %v2866_v63 = vmul.f32 0.35355338, %v2861_v62  ;;  %v4353_v2 = vpop.f32.mrb[39].mxu1 }
0x17a3   :  { %v2870_v5 = vsel %vm229_vm5, %v2866_v63, -inf }
0x17a4   :  { %2871 = vmax.xlane.f32.xlu1 %v2870_v5 }
0x17b5   :  { %2889 = vrot.lane.b32.xlu1 %v5196_v38, %s4743_s15 }
0x17b6   :  { %2965 = vrot.lane.b32.xlu0 %v5194_v36, %s4743_s15 }
0x17b9   :  { %3043 = vrot.lane.b32.xlu1 %v5196_v38, %s4744_s16 }
0x17bd   :  { %3121 = vrot.lane.b32.xlu1 %v5194_v36, %s4744_s16 }
0x17c1   :  { %3119 = vrot.lane.b32.xlu1 %v5194_v36, %s4745_s0 }
0x182d   :  { %v2869_v6 = vpop.xlane.xlu0 %2868 }
0x182e   :  { %v2873_v40 = vsub.f32 %v2865_v59, %v2869_v6 }
0x1830   :  { %v2875_v56 = vmul.f32 1.442695, %v2873_v40 }
0x1831   :  { %v2966_v10 = vpop.permute.xlu0 %2965  ;;  %v2872_v15 = vpop.xlane.xlu1 %2871 }
0x1832   :  { %4685 = vpow2.f32 %v2875_v56  ;;  %v2874_v18 = vsub.f32 %v2866_v63, %v2872_v15  ;;  %4360 = vmatpush3.msra.mxu1 %v2966_v10 }
0x1833   :  { %4369 = vmatprep.subr.mxu1 %v4734_v11 }
0x1834   :  { %v2877_v19 = vmul.f32 1.442695, %v2874_v18 }
0x1835   :  { %v2890_v22 = vpop.permute.xlu1 %2889 }
0x1836   :  { %4687 = vpow2.f32 %v2877_v19  ;;  %4355 = vmatpush3.msra.mxu0 %v2890_v22 }
0x1837   :  { %4364 = vmatprep.subr.mxu0 %v4734_v11 }
0x1839   :  { %v3044_v35 = vpop.permute.xlu1 %3043 }
0x183c   :  { %v4686_v23 = vpop.eup %4685 }
0x183d   :  { %v2879_v24 = vsel %vm229_vm5, %v4686_v23, 0.0  ;;  %v3122_v43 = vpop.permute.xlu1 %3121 }
0x183e   :  { %2880 = vadd.xlane.f32.xlu0 %v2879_v24 }
0x1840   :  { %v4688_v27 = vpop.eup %4687 }
0x1841   :  { %v2882_v28 = vsel %vm229_vm5, %v4688_v27, 0.0  ;;  %v3120_v46 = vpop.permute.xlu1 %3119 }
0x1842   :  { %2883 = vadd.xlane.f32.xlu0 %v2882_v28 }
0x1858   :  { %3041 = vrot.lane.b32.xlu0 %v5196_v38, %s4745_s0 }
0x18cb   :  { %v2881_v30 = vpop.xlane.xlu0 %2880 }
0x18cc   :  { %4689 = vrcp.f32 %v2881_v30 }
0x18cf   :  { %v2884_v12 = vpop.xlane.xlu0 %2883 }
0x18d0   :  { %4691 = vrcp.f32 %v2884_v12 }
0x18d3   :  { %v3042_v45 = vpop.permute.xlu0 %3041 }
0x18d6   :  { %v4690_v37 = vpop.eup %4689 }
0x18d7   :  { %v2887_v41 = vmul.f32 %v4690_v37, %v4686_v23 }
0x18d9   :  { %4357 = vmatmul.mubr.msk.f32.vlgmr.msra.gmra.mrb[24].mxu0 %vm229_vm5, %v2887_v41 }
0x18da   :  { %v4692_v42 = vpop.eup %4691  ;;  %4365 = vmatpush3.xpose.msk.msra.mxu0 %vm229_vm5, %v3044_v35  ;;  %4366 = vmatprep.mubr.msk.f32.mxu0 %vm4735_vm4, %v4734_v11 }
0x18db   :  { %v2888_v44 = vmul.f32 %v4692_v42, %v4688_v27  ;;  %4374 = vmatprep.subr.mxu0 %v4734_v11 }
0x18dd   :  { %4362 = vmatmul.mubr.msk.f32.vlgmr.msra.gmra.mrb[40].mxu1 %vm229_vm5, %v2888_v44  ;;  %4367 = vmatmul.mubr.msk.f32.vlgmr.msra.gmra.mrb[26].mxu0 %vm229_vm5, %v3042_v45 }
0x18de   :  { %4370 = vmatpush3.xpose.msk.msra.mxu1 %vm229_vm5, %v3122_v43  ;;  %4371 = vmatprep.mubr.msk.f32.mxu1 %vm4735_vm4, %v4734_v11 }
0x18df   :  { %4379 = vmatprep.subr.mxu1 %v4734_v11  ;;  %4376 = vmatprep.mubr.msk.f32.mxu0 %vm4735_vm4, %v4734_v11 }
0x18e1   :  { %4372 = vmatmul.mubr.msk.f32.vlgmr.msra.gmra.mrb[42].mxu1 %vm229_vm5, %v3120_v46 }
0x18e2   :  { %4381 = vmatprep.mubr.msk.f32.mxu1 %vm4735_vm4, %v4734_v11  ;;  %v4619_v11 = vpack.i.bf16 %v5155_v1, %v5150_v0 }
0x19ac   :  { %v2961_v47 = vpop.f32.mrb[24].mxu0 }
0x19ad   :  { %v4358_v48 = vpop.f32.mrb[25].mxu0 }
0x19b0   :  { %v3037_v49 = vpop.f32.mrb[40].mxu1  ;;  %v3115_v32 = vpop.f32.mrb[26].mxu0 }
0x19b1   :  { %v3197_v31 = vmul.f32 0.35355338, %v3115_v32  ;;  %v4363_v51 = vpop.f32.mrb[41].mxu1  ;;  %v4368_v39 = vpop.f32.mrb[27].mxu0 }
0x19b3   :  { %v3199_v52 = vsel %vm229_vm5, %v3197_v31, -inf }
0x19b4   :  { %3200 = vmax.xlane.f32.xlu0 %v3199_v52  ;;  %v3193_v53 = vpop.f32.mrb[42].mxu1 }
0x19b5   :  { %v3198_v16 = vmul.f32 0.35355338, %v3193_v53  ;;  %v4373_v17 = vpop.f32.mrb[43].mxu1 }
0x19b7   :  { %v3202_v55 = vsel %vm229_vm5, %v3198_v16, -inf }
0x19b8   :  { %3203 = vmax.xlane.f32.xlu1 %v3202_v55 }
0x19c9   :  { %3221 = vrot.lane.b32.xlu1 %v5196_v38, %s4746_s17 }
0x19cd   :  { %4620 = vrot.lane.b32.xlu1 %v4619_v11, %s4747_s18 }
0x19d1   :  { %4625 = vrot.lane.b32.xlu1 %v4624_v25, %s4747_s18 }
0x19d5   :  { %3377 = vrot.lane.b32.xlu1 %v5288_v26, %s4748_s19 }
0x19d9   :  { %3385 = vrot.lane.b32.xlu1 %v3037_v49, %s4749_s20 }
0x1a41   :  { %v3201_v58 = vpop.xlane.xlu0 %3200 }
0x1a42   :  { %v3205_v59 = vsub.f32 %v3197_v31, %v3201_v58 }
0x1a44   :  { %v3207_v54 = vmul.f32 1.442695, %v3205_v59 }
0x1a45   :  { %v3204_v60 = vpop.xlane.xlu1 %3203 }
0x1a46   :  { %4693 = vpow2.f32 %v3207_v54  ;;  %v3206_v38 = vsub.f32 %v3198_v16, %v3204_v60 }
0x1a48   :  { %v3209_v61 = vmul.f32 1.442695, %v3206_v38 }
0x1a49   :  { %v3222_v0 = vpop.permute.xlu1 %3221 }
0x1a4a   :  { %4695 = vpow2.f32 %v3209_v61  ;;  %4375 = vmatpush3.msra.mxu0 %v3222_v0  ;;  %v3949_v61 = vld [vmem:[%s5495_s3 + $0x28] sm:$0xff]  ;;  %v3950_v0 = vld [vmem:[%s5495_s3 + $0x30] sm:$0xff] }
0x1a4d   :  { %v4621_v1 = vpop.permute.xlu1 %4620 }
0x1a4e   :  { %v4623_v62 = vunpack.i.h.bf16 %v4621_v1  ;;  %v4622_v3 = vunpack.i.l.bf16 %v4621_v1  ;;  %v4540_v1 = vpack.c.bf16 %v3950_v0, %v3949_v61 }
0x1a50   :  { %v4694_v4 = vpop.eup %4693  ;;  %v4532_v63 = vpack.c.bf16 %v4623_v62, %v4622_v3  ;;  %v3951_v62 = vld [vmem:[%s5495_s3 + $0x38] sm:$0xff]  ;;  %v3952_v3 = vld [vmem:[%s5495_s3 + $0x40] sm:$0xff] }
0x1a51   :  { %v3211_v2 = vsel %vm229_vm5, %v4694_v4, 0.0  ;;  %v4626_v56 = vpop.permute.xlu1 %4625 }
0x1a52   :  { %3212 = vadd.xlane.f32.xlu0 %v3211_v2  ;;  %4533 = vmatprep.subr.bf16.mxu0 %v4532_v63  ;;  %v4628_v10 = vunpack.i.h.bf16 %v4626_v56  ;;  %v4627_v15 = vunpack.i.l.bf16 %v4626_v56  ;;  %v3955_v2 = vld [vmem:[%s5496_s4 + $0x88] sm:$0xff]  ;;  %v3958_v56 = vld [vmem:[%s5496_s4 + $0xa0] sm:$0xff] }
0x1a54   :  { %v4696_v26 = vpop.eup %4695  ;;  %v4536_v22 = vpack.c.bf16 %v4628_v10, %v4627_v15  ;;  %v3959_v10 = vld [vmem:[%s5496_s4 + $0xa8] sm:$0xff] }
0x1a55   :  { %v3214_v5 = vsel %vm229_vm5, %v4696_v26, 0.0  ;;  %v3378_v35 = vpop.permute.xlu1 %3377  ;;  %v4556_v15 = vpack.c.bf16 %v3959_v10, %v3958_v56 }
0x1a56   :  { %3215 = vadd.xlane.f32.xlu0 %v3214_v5  ;;  %v3398_v46 = vsel %vm229_vm5, %v5250_v8, %v3378_v35 }
0x1a59   :  { %v3386_v42 = vpop.permute.xlu1 %3385 }
0x1a6c   :  { %3297 = vrot.lane.b32.xlu0 %v5194_v36, %s4746_s17 }
0x1a70   :  { %3375 = vrot.lane.b32.xlu0 %v5286_v57, %s4748_s19 }
0x1a74   :  { %3383 = vrot.lane.b32.xlu0 %v2961_v47, %s4749_s20  ;;  %v3400_v47 = vsel %vm1579_vm6, %v3398_v46, %v3386_v42 }
0x1adf   :  { %v3213_v6 = vpop.xlane.xlu0 %3212 }
0x1ae0   :  { %4697 = vrcp.f32 %v3213_v6  ;;  %v3957_v6 = vld [vmem:[%s5496_s4 + $0x98] sm:$0xff] }
0x1ae3   :  { %v3216_v40 = vpop.xlane.xlu0 %3215 }
0x1ae4   :  { %4699 = vrcp.f32 %v3216_v40 }
0x1ae7   :  { %v3298_v18 = vpop.permute.xlu0 %3297 }
0x1ae8   :  { %4380 = vmatpush3.msra.mxu1 %v3298_v18  ;;  %v3960_v18 = vld [vmem:[%s5496_s4 + $0xb0] sm:$0xff] }
0x1ae9   :  { %4541 = vmatprep.subr.bf16.mxu1 %v4540_v1 }
0x1aea   :  { %v4698_v19 = vpop.eup %4697 }
0x1aeb   :  { %v3219_v23 = vmul.f32 %v4698_v19, %v4694_v4  ;;  %v3376_v12 = vpop.permute.xlu0 %3375  ;;  %v4544_v4 = vpack.c.bf16 %v3952_v3, %v3951_v62  ;;  %v3961_v19 = vld [vmem:[%s5496_s4 + $0xb8] sm:$0xff] }
0x1aec   :  { %v3397_v41 = vsel %vm229_vm5, %v5248_v7, %v3376_v12  ;;  %v5361_v7 = vld [vmem:[%s5497_s5 + $0x8] sm:$0xff]  ;;  %s4709_s5 = scalar_lea.vmem %s3871_s8, 256 }
0x1aed   :  { %4377 = vmatmul.mubr.msk.f32.vlgmr.msra.gmra.mrb[28].mxu0 %vm229_vm5, %v3219_v23  ;;  %v3406_v32 = vrot.slane %v5361_v7, %v4869_v34  ;;  %v3962_v23 = vld [vmem:[%s5496_s4 + $0xc0] sm:$0xff]  ;;  %v3967_v12 = vld [vmem:[%s5496_s4 + $0xe8] sm:$0xff]  ;;  %v3535_v46 = vrot.slane %v5361_v7, %v1717_v20  ;;  %v3968_v20 = vld [vmem:[%s5496_s4 + $0xf0] sm:$0xff]  ;;  %p4710_p0 = scmp.ne.s32.totalorder %s3871_s8, %s4709_s5  ;;  %p4715_p2 = scmp.lt.s32.totalorder %s4709_s5, %s4709_s5 }
0x1aee   :  { %v4700_v36 = vpop.eup %4699  ;;  %4535 = vmatpush3.bf16.msra.mxu0 %v4532_v63  ;;  %v3954_v63 = vld [vmem:[%s5496_s4 + $0x80] sm:$0xff] }
0x1aef   :  { %v3220_v24 = vmul.f32 %v4700_v36, %v4696_v26  ;;  %4537 = vmatprep.subr.bf16.mxu0 %v4536_v22  ;;  %v3384_v37 = vpop.permute.xlu0 %3383  ;;  %v3956_v26 = vld [vmem:[%s5496_s4 + $0x90] sm:$0xff]  ;;  %v4548_v5 = vpack.c.bf16 %v3955_v2, %v3954_v63  ;;  %v3963_v36 = vld [vmem:[%s5496_s4 + $0xc8] sm:$0xff]  ;;  %p4716_p3 = por %p4715_p2, %p4714_p1 }
0x1af0   :  { %v3399_v43 = vsel %vm1579_vm6, %v3397_v41, %v3384_v37  ;;  %v4552_v40 = vpack.c.bf16 %v3957_v6, %v3956_v26 }
0x1af1   :  { %4382 = vmatmul.mubr.msk.f32.vlgmr.msra.gmra.mrb[44].mxu1 %vm229_vm5, %v3220_v24  ;;  %v4564_v24 = vpack.c.bf16 %v3963_v36, %v3962_v23  ;;  %v3776_v23 = vld [vmem:[%s5498_s6 + $0x18] sm:$0xff]  ;;  %p4717_p4 = pnand %p4716_p3, %p4710_p0 }
0x1af2   :  { %4539 = vmatpush3.bf16.msra.mxu0 %v4536_v22  ;;  %4543 = vmatpush3.bf16.msra.mxu1 %v4540_v1  ;;  %v4560_v22 = vpack.c.bf16 %v3961_v19, %v3960_v18  ;;  %v3774_v18 = vld [vmem:[%s5498_s6 + $0x8] sm:$0xff] }
0x1af3   :  { %4545 = vmatprep.subr.bf16.mxu1 %v4544_v4  ;;  %4549 = vmatprep.subr.bf16.mxu0 %v4548_v5 }
0x1af6   :  { %4547 = vmatpush3.bf16.msra.mxu1 %v4544_v4 }
0x1bc0   :  { %v3293_v57 = vpop.f32.mrb[28].mxu0 }
0x1bc1   :  { %3391 = vrot.lane.b32.xlu0 %v3293_v57, %s4750_s21  ;;  %v4378_v27 = vpop.f32.mrb[29].mxu0  ;;  %v3964_v57 = vld [vmem:[%s5496_s4 + $0xd0] sm:$0xff] }
0x1bc2   :  { %v3965_v27 = vld [vmem:[%s5496_s4 + $0xd8] sm:$0xff] }
0x1bc4   :  { %v3369_v28 = vpop.f32.mrb[44].mxu1 }
0x1bc5   :  { %3393 = vrot.lane.b32.xlu1 %v3369_v28, %s4750_s21  ;;  %v4383_v30 = vpop.f32.mrb[45].mxu1  ;;  %v4568_v28 = vpack.c.bf16 %v3965_v27, %v3964_v57 }
0x1bc6   :  { %v3966_v30 = vld [vmem:[%s5496_s4 + $0xe0] sm:$0xff] }
0x1bc7   :  { %v4572_v35 = vpack.c.bf16 %v3967_v12, %v3966_v30 }
0x1c33   :  { %v3392_v44 = vpop.permute.xlu0 %3391 }
0x1c34   :  { %v3401_v45 = vsel %vm1582_vm7, %v3399_v43, %v3392_v44 }
0x1c35   :  { %4392 = vmatprep.mubr.msk.f32.mxu0 %vm144_vm3, %v3401_v45 }
0x1c37   :  { %v3394_v48 = vpop.permute.xlu1 %3393 }
0x1c38   :  { %v3402_v49 = vsel %vm1582_vm7, %v3400_v47, %v3394_v48 }
0x1c39   :  { %4393 = vmatmul.mubr.msk.f32.vlgmr.msra.gmra.mrb[30].mxu0 %vm144_vm3, %v3402_v49  ;;  %v3541_v49 = vrot.slane %v5361_v7, %v1723_v21 }
0x1c3a   :  { %4551 = vmatpush3.bf16.msra.mxu0 %v4548_v5 }
0x1c3b   :  { %4553 = vmatprep.subr.bf16.mxu0 %v4552_v40 }
0x1c3e   :  { %4555 = vmatpush3.bf16.msra.mxu0 %v4552_v40 }
0x1c3f   :  { %4557 = vmatprep.subr.bf16.mxu0 %v4556_v15 }
0x1c42   :  { %4559 = vmatpush3.bf16.msra.mxu0 %v4556_v15  ;;  %v3773_v15 = vld [vmem:[%s5498_s6] sm:$0xff] }
0x1c43   :  { %4561 = vmatprep.subr.bf16.mxu0 %v4560_v22  ;;  %v4580_v19 = vpack.c.bf16 %v3774_v18, %v3773_v15 }
0x1c45   :  { %4581 = vmatprep.subr.bf16.mxu1 %v4580_v19 }
0x1c46   :  { %4563 = vmatpush3.bf16.msra.mxu0 %v4560_v22  ;;  %v3775_v22 = vld [vmem:[%s5498_s6 + $0x10] sm:$0xff] }
0x1c47   :  { %4565 = vmatprep.subr.bf16.mxu0 %v4564_v24  ;;  %v4584_v36 = vpack.c.bf16 %v3776_v23, %v3775_v22 }
0x1c4a   :  { %4567 = vmatpush3.bf16.msra.mxu0 %v4564_v24 }
0x1c4b   :  { %4569 = vmatprep.subr.bf16.mxu0 %v4568_v28 }
0x1c4e   :  { %4571 = vmatpush3.bf16.msra.mxu0 %v4568_v28 }
0x1c4f   :  { %4573 = vmatprep.subr.bf16.mxu0 %v4572_v35 }
0x1c52   :  { %4575 = vmatpush3.bf16.msra.mxu0 %v4572_v35  ;;  %v3764_v35 = vrot.slane %v5361_v7, %v1944_v13  ;;  %v3777_v13 = vld [vmem:[%s5498_s6 + $0x20] sm:$0xff] }
0x1d0c   :  { %v4394_v31 = vpop.f32.mrb[30].mxu0 }
0x1d0d   :  { %v3501_v51 = vadd.f32 %v4394_v31, %v3406_v32  ;;  %v3495_v39 = vpop.f32.mrb[31].mxu0 }
0x1d0e   :  { %v3496_v52 = vadd.f32 %v3495_v39, %v3406_v32 }
0x1d0f   :  { %v3505_v8 = vadd.f32 %v3501_v51, %v5182_v9 }
0x1d10   :  { %v3504_v53 = vadd.f32 %v3496_v52, %v5180_v29 }
0x1d11   :  { %v3509_v16 = vsel %vm144_vm3, %v3505_v8, 0.0 }
0x1d12   :  { %3510 = vadd.xlane.f32.xlu1 %v3509_v16  ;;  %v3506_v17 = vsel %vm144_vm3, %v3504_v53, 0.0  ;;  %v3953_v16 = vld [vmem:[%s5495_s3 + $0x48] sm:$0xff] }
0x1d13   :  { %3507 = vadd.xlane.f32.xlu0 %v3506_v17  ;;  %v3570_v17 = vrot.slane %v3953_v16, %v4869_v34 }
0x1d9f   :  { %v3511_v55 = vpop.xlane.xlu1 %3510 }
0x1da0   :  { %v3513_v11 = vmul.f32 0.03125, %v3511_v55  ;;  %v3508_v25 = vpop.xlane.xlu0 %3507 }
0x1da1   :  { %v3512_v58 = vmul.f32 0.03125, %v3508_v25 }
0x1da2   :  { %v5369_v59 = vsub.f32 %v3505_v8, %v3513_v11 }
0x1da3   :  { %v3514_v54 = vsub.f32 %v3504_v53, %v3512_v58  ;;  %v3969_v53 = vld [vmem:[%s5496_s4 + $0xf8] sm:$0xff] }
0x1da4   :  { %v3517_v9 = vmul.f32 %v5369_v59, %v5369_v59  ;;  %v4576_v21 = vpack.c.bf16 %v3969_v53, %v3968_v20 }
0x1da5   :  { %v3516_v60 = vmul.f32 %v3514_v54, %v3514_v54 }
0x1da6   :  { %v3521_v29 = vsel %vm144_vm3, %v3517_v9, 0.0  ;;  %4577 = vmatprep.subr.bf16.mxu0 %v4576_v21 }
0x1da7   :  { %v3518_v38 = vsel %vm144_vm3, %v3516_v60, 0.0  ;;  %4579 = vmatpush3.bf16.msra.mxu0 %v4576_v21  ;;  %v3657_v60 = vrot.slane %v5361_v7, %v1837_v50 }
0x1da8   :  { %3519 = vadd.xlane.f32.xlu0 %v3518_v38 }
0x1dac   :  { %3522 = vadd.xlane.f32.xlu0 %v3521_v29 }
0x1e35   :  { %v3520_v37 = vpop.xlane.xlu0 %3519 }
0x1e36   :  { %v3524_v41 = vmul.f32 0.03125, %v3520_v37 }
0x1e38   :  { %v3526_v42 = vadd.f32 1e-05, %v3524_v41 }
0x1e39   :  { %v3523_v43 = vpop.xlane.xlu0 %3522 }
0x1e3a   :  { %4701 = vrsqrt.f32 %v3526_v42  ;;  %v3525_v44 = vmul.f32 0.03125, %v3523_v43 }
0x1e3c   :  { %v3527_v45 = vadd.f32 1e-05, %v3525_v44  ;;  %v3770_v44 = vrot.slane %v5361_v7, %v1950_v14 }
0x1e3e   :  { %4703 = vrsqrt.f32 %v3527_v45 }
0x1e44   :  { %v4702_v47 = vpop.eup %4701 }
0x1e45   :  { %v3530_v48 = vmul.f32 %v4702_v47, %v3514_v54 }
0x1e47   :  { %v3536_v32 = vmul.f32 %v3535_v46, %v3530_v48 }
0x1e48   :  { %v4704_v31 = vpop.eup %4703 }
0x1e49   :  { %v3531_v51 = vmul.f32 %v4704_v31, %v5369_v59  ;;  %v3542_v39 = vadd.f32 %v3541_v49, %v3536_v32 }
0x1e4b   :  { %v3537_v52 = vmul.f32 %v3535_v46, %v3531_v51  ;;  %4403 = vmatprep.mubr.msk.f32.mxu1 %vm144_vm3, %v3542_v39 }
0x1e4d   :  { %v3543_v8 = vadd.f32 %v3541_v49, %v3537_v52  ;;  %v3781_v49 = vrot.slane %v3777_v13, %v4869_v34 }
0x1e4f   :  { %4404 = vmatmul.mubr.msk.f32.vlgmr.msra.gmra.mrb[46].mxu1 %vm144_vm3, %v3543_v8 }
0x1e50   :  { %4583 = vmatpush3.bf16.msra.mxu1 %v4580_v19 }
0x1e51   :  { %4585 = vmatprep.subr.bf16.mxu1 %v4584_v36 }
0x1e54   :  { %4587 = vmatpush3.bf16.msra.mxu1 %v4584_v36 }
0x1f22   :  { %v4405_v55 = vpop.f32.mrb[46].mxu1 }
0x1f23   :  { %v3649_v11 = vadd.f32 %v4405_v55, %v3570_v17  ;;  %v3643_v25 = vpop.f32.mrb[47].mxu1 }
0x1f24   :  { %v3644_v58 = vadd.f32 %v3643_v25, %v3570_v17 }
0x1f25   :  { %v3653_v54 = vmax.f32 %v3649_v11, 0.0 }
0x1f26   :  { %v3652_v59 = vmax.f32 %v3644_v58, 0.0 }
0x1f28   :  { %4438 = vmatprep.mubr.f32.mxu0 %v3652_v59 }
0x1f29   :  { %4439 = vmatmul.mubr.f32.vlgmr.msra.gmra.mrb[32].mxu0 %v3653_v54 }
0x1ffc   :  { %v4440_v38 = vpop.f32.mrb[32].mxu0 }
0x1ffd   :  { %v3730_v9 = vadd.f32 %v4440_v38, %v3657_v60  ;;  %v3724_v29 = vpop.f32.mrb[33].mxu0 }
0x1ffe   :  { %v3725_v61 = vadd.f32 %v3724_v29, %v3657_v60 }
0x1fff   :  { %v3734_v0 = vadd.f32 %v3730_v9, %v3543_v8 }
0x2000   :  { %v3733_v1 = vadd.f32 %v3725_v61, %v3542_v39 }
0x2001   :  { %v3738_v62 = vsel %vm144_vm3, %v3734_v0, 0.0 }
0x2002   :  { %3739 = vadd.xlane.f32.xlu0 %v3738_v62  ;;  %v3735_v3 = vsel %vm144_vm3, %v3733_v1, 0.0 }
0x2003   :  { %3736 = vadd.xlane.f32.xlu1 %v3735_v3 }
0x208f   :  { %v3740_v4 = vpop.xlane.xlu0 %3739 }
0x2090   :  { %v3742_v63 = vmul.f32 0.03125, %v3740_v4  ;;  %v3737_v2 = vpop.xlane.xlu1 %3736 }
0x2091   :  { %v3741_v26 = vmul.f32 0.03125, %v3737_v2 }
0x2092   :  { %v3744_v5 = vsub.f32 %v3734_v0, %v3742_v63 }
0x2093   :  { %v3743_v6 = vsub.f32 %v3733_v1, %v3741_v26 }
0x2094   :  { %v3746_v40 = vmul.f32 %v3744_v5, %v3744_v5 }
0x2095   :  { %v3745_v50 = vmul.f32 %v3743_v6, %v3743_v6 }
0x2096   :  { %v3750_v56 = vsel %vm144_vm3, %v3746_v40, 0.0 }
0x2097   :  { %3751 = vadd.xlane.f32.xlu0 %v3750_v56  ;;  %v3747_v10 = vsel %vm144_vm3, %v3745_v50, 0.0 }
0x2098   :  { %3748 = vadd.xlane.f32.xlu1 %v3747_v10 }
0x2124   :  { %v3752_v24 = vpop.xlane.xlu0 %3751 }
0x2125   :  { %v3754_v57 = vmul.f32 0.03125, %v3752_v24  ;;  %v3749_v27 = vpop.xlane.xlu1 %3748 }
0x2126   :  { %v3753_v28 = vmul.f32 0.03125, %v3749_v27 }
0x2127   :  { %v3756_v30 = vadd.f32 1e-05, %v3754_v57 }
0x2128   :  { %v3755_v12 = vadd.f32 1e-05, %v3753_v28 }
0x2129   :  { %4705 = vrsqrt.f32 %v3756_v30 }
0x212a   :  { %4707 = vrsqrt.f32 %v3755_v12 }
0x2133   :  { %v4706_v37 = vpop.eup %4705 }
0x2134   :  { %v4708_v41 = vpop.eup %4707  ;;  %v3760_v42 = vmul.f32 %v4706_v37, %v3744_v5 }
0x2135   :  { %v3759_v43 = vmul.f32 %v4708_v41, %v3743_v6 }
0x2136   :  { %v3766_v45 = vmul.f32 %v3764_v35, %v3760_v42 }
0x2137   :  { %v3765_v46 = vmul.f32 %v3764_v35, %v3759_v43 }
0x2138   :  { %v3772_v48 = vadd.f32 %v3770_v44, %v3766_v45 }
0x2139   :  { %v3771_v47 = vadd.f32 %v3770_v44, %v3765_v46 }
0x213b   :  { %4449 = vmatprep.mubr.msk.f32.mxu1 %vm144_vm3, %v3771_v47 }
0x213c   :  { %4450 = vmatmul.mubr.msk.f32.vlgmr.msra.gmra.mrb[48].mxu1 %vm144_vm3, %v3772_v48 }
0x220f   :  { %v4451_v32 = vpop.f32.mrb[48].mxu1 }
0x2210   :  { %v3860_v33 = vadd.f32 %v4451_v32, %v3781_v49  ;;  %v3854_v31 = vpop.f32.mrb[49].mxu1 }
0x2211   :  { %v3855_v14 = vadd.f32 %v3854_v31, %v3781_v49 }
0x2212   :  { %3864 = vst [vmem:[#allocation2 + $0x8] sm:$0xff] %v3860_v33 }
0x2213   :  { %3863 = vst [vmem:[#allocation2] sm:$0xff] %v3855_v14 }
0x2214   :  { %4720 = shalt.err (!%p4717_p4)
}
0x2215   :  { %s4721_s10 = scalar_lea.hbm %s5499_s7, 256 }
0x2216   :  { %p4722_p5 = scmp.ne.s32.totalorder %s5499_s7, %s4721_s10  ;;  %p4725_p6 = scmp.lt.u32.totalorder %s4721_s10, %s5499_s7 }
0x2218   :  { %p4727_p7 = pnand %p4725_p6, %p4722_p5 }
0x221a   :  { %4730 = shalt.err (!%p4727_p7)
}
0x221b   :  { %s4752_s15 = smov 128  }
0x221c   :  { %3876 = dma.vmem_to_hbm [thread:$0]  %s3871_s8, 256, %s5499_s7, [#allocation3], %s4752_s15, %s4752_s15, %s4748_s19  }
0x221d   :  { %4731 = dma.done.wait [#allocation3], 256  }
0x221e   :  { %4732 = vsyncadd [#allocation3], 4294967040 }
0x221f   :  { %3880 = vsyncpa [#allocation3], 1 }

</bundles_post_ra>
